<compile_context>
chip_gen: v7x
topology: tpu7x:2x2x1
jax: 0.10.0
libtpu: 0.0.40
codegen_flags: <defaults>
</compile_context>

<pallas_src>
import functools

import jax
import jax.numpy as jnp
import numpy as np
from jax import lax
from jax.experimental import pallas as pl
from jax.experimental.pallas import tpu as pltpu

C1 = 100   # conv1 output channels (fixed by the module)
C2 = 20    # conv2 output channels (fixed by the module)


def _round_up(x, m):
    return (x + m - 1) // m * m


# ----------------------------------------------------------------------------
# Fused kernel: one batch sample per grid step, everything resident in VMEM.
# ----------------------------------------------------------------------------
def _fused_kernel(xp_ref, w1_ref, w2_ref, wl_ref, b_ref, o_ref, h1p_ref,
                  *, Ho, Wo, H2, W2):
    cin = xp_ref.shape[-1]
    m1 = Ho * Wo

    # ---- conv1: 3x3 / stride 2 as shift-and-accumulate over 9 taps ---------
    # xp_ref holds the parity-decomposed, front-padded input:
    #   xp_ref[ry*2+rx, 1+iy, 1+jx, c] = x[2*iy+ry, 2*jx+rx, c]  (index 0 = zero pad)
    planes = [xp_ref[p] for p in range(4)]               # each [Ho+1, Wo+1, cin]
    acc1 = jnp.zeros((m1, C1), jnp.float32)
    for dy in range(3):
        ry = 0 if dy == 1 else 1
        sy = 0 if dy == 0 else 1
        for dx in range(3):
            rx = 0 if dx == 1 else 1
            sx = 0 if dx == 0 else 1
            win = planes[2 * ry + rx][sy:sy + Ho, sx:sx + Wo, :]   # [Ho, Wo, cin]
            acc1 = acc1 + jnp.dot(
                win.reshape(m1, cin).astype(jnp.bfloat16),
                w1_ref[3 * dy + dx],
                preferred_element_type=jnp.float32)

    # ---- conv1 activation, zero-padded spatially, stays in VMEM scratch ----
    h1p_ref[...] = jnp.zeros(h1p_ref.shape, h1p_ref.dtype)
    h1p_ref[1:1 + Ho, 1:1 + Wo, :] = acc1.reshape(Ho, Wo, C1)

    # ---- conv2: dense (stride-1) shift-and-accumulate ----------------------
    # The true stride-2 outputs are the (even, even) rows of this dense result;
    # they are the only rows consumed by the linear layer below.
    acc2 = jnp.zeros((m1, C2), jnp.float32)
    for dy in range(3):
        for dx in range(3):
            win = h1p_ref[dy:dy + Ho, dx:dx + Wo, :]               # [Ho, Wo, C1]
            acc2 = acc2 + jnp.dot(
                win.reshape(m1, C1).astype(jnp.bfloat16),
                w2_ref[3 * dy + dx],
                preferred_element_type=jnp.float32)

    # ---- linear (over the stride-2 positions) + ReLU ------------------------
    out = b_ref[...]                                               # [1, Npad] f32
    for i2 in range(H2):
        for j2 in range(W2):
            r = (2 * i2) * Wo + 2 * j2       # dense conv2 row of this position
            p = i2 * W2 + j2                 # linear-weight position index
            out = out + jnp.dot(
                acc2[r:r + 1, :].astype(jnp.bfloat16),
                wl_ref[p],
                preferred_element_type=jnp.float32)
    o_ref[0] = jnp.maximum(out, 0.0)


# ----------------------------------------------------------------------------
# XLA glue: one rearranged copy of x (no 9x im2col duplication).
# ----------------------------------------------------------------------------
def _prep_input(x):
    """[B,H,W,Cin] f32 -> parity-decomposed, front-padded [B*4, H/2+1, W/2+1, Cin]."""
    B, H, W, Cin = x.shape
    Ho, Wo = H // 2, W // 2
    xr = x.reshape(B, Ho, 2, Wo, 2, Cin)                  # (b, iy, ry, jx, rx, c)
    xr = xr.transpose(0, 2, 4, 1, 3, 5)                   # (b, ry, rx, iy, jx, c)
    xr = jnp.pad(xr, ((0, 0), (0, 0), (0, 0), (1, 0), (1, 0), (0, 0)))
    return xr.reshape(B * 4, Ho + 1, Wo + 1, Cin)


# ----------------------------------------------------------------------------
# Full forward pass (one pallas_call)
# ----------------------------------------------------------------------------
def offset_regr_forward(params, x, *, stride=2):
    """x: [B, H, W, inp_dim] (NHWC).  Returns [B, resolution]."""
    B, H, W, Cin = x.shape
    # TODO(synk): this fused kernel specializes to the module's stride=2 / even
    # spatial configuration; other strides would need the generic im2col path.
    assert stride == 2 and H % 4 == 0 and W % 4 == 0, (stride, H, W)
    Ho, Wo = H // 2, W // 2
    H2, W2 = Ho // 2, Wo // 2
    res = H2 * W2
    npad = params["wl"].shape[-1]
    assert params["wl"].shape == (res, C2, npad), params["wl"].shape

    xp = _prep_input(x)

    flops = int(B * (2 * 9 * Ho * Wo * Cin * C1
                     + 2 * 9 * Ho * Wo * C1 * C2
                     + 2 * res * C2 * npad))
    bytes_accessed = int(
        xp.size * xp.dtype.itemsize
        + params["w1"].size * 2 + params["w2"].size * 2 + params["wl"].size * 2
        + params["b"].size * 4 + B * npad * 4)

    kernel = functools.partial(_fused_kernel, Ho=Ho, Wo=Wo, H2=H2, W2=W2)
    out = pl.pallas_call(
        kernel,
        out_shape=jax.ShapeDtypeStruct((B, 1, npad), jnp.float32),
        grid_spec=pltpu.PrefetchScalarGridSpec(
            num_scalar_prefetch=0,
            grid=(B,),
            in_specs=[
                pl.BlockSpec((4, Ho + 1, Wo + 1, Cin), lambda b: (b, 0, 0, 0)),
                pl.BlockSpec((9, Cin, C1), lambda b: (0, 0, 0)),
                pl.BlockSpec((9, C1, C2), lambda b: (0, 0, 0)),
                pl.BlockSpec((res, C2, npad), lambda b: (0, 0, 0)),
                pl.BlockSpec((1, npad), lambda b: (0, 0)),
            ],
            out_specs=pl.BlockSpec((1, 1, npad), lambda b: (b, 0, 0)),
            scratch_shapes=[pltpu.VMEM((Ho + 2, Wo + 2, C1), jnp.float32)],
        ),
        compiler_params=pltpu.CompilerParams(
            dimension_semantics=("parallel",),
            vmem_limit_bytes=32 * 1024 * 1024,
        ),
        cost_estimate=pl.CostEstimate(flops=flops, transcendentals=0,
                                      bytes_accessed=bytes_accessed),
    )(xp, params["w1"], params["w2"], params["wl"], params["b"])
    return out.reshape(B, npad)[:, :res]


def init_params(key, inp_dim, resolution):
    ks = jax.random.split(key, 4)
    s = 0.02
    npad = _round_up(resolution, 128)
    w1 = jax.random.normal(ks[0], (3, 3, inp_dim, C1), jnp.float32) * s
    w2 = jax.random.normal(ks[1], (3, 3, C1, C2), jnp.float32) * s
    lin_w = jax.random.normal(ks[2], (C2 * resolution, resolution), jnp.float32) * s
    lin_b = jax.random.normal(ks[3], (resolution,), jnp.float32) * s
    # Weights pre-reshaped / padded / cast to bf16 ONCE at init (hoisted out of
    # the per-forward path); bias kept f32 and lane-padded to 128.
    wl3 = lin_w.reshape(resolution, C2, resolution)       # [p, c, n]; p = (h, w)
    wl3 = jnp.pad(wl3, ((0, 0), (0, 0), (0, npad - resolution)))
    return {
        "w1": w1.reshape(9, inp_dim, C1).astype(jnp.bfloat16),
        "w2": w2.reshape(9, C1, C2).astype(jnp.bfloat16),
        "wl": wl3.astype(jnp.bfloat16),
        "b": jnp.pad(lin_b, (0, npad - resolution)).reshape(1, npad),
    }


# f32 XLA reference (same bf16-stored weights upcast to f32) for validation.
def ref_forward(params, x, *, stride=2):
    B = x.shape[0]
    cin = params["w1"].shape[1]
    res = params["wl"].shape[0]
    w1 = params["w1"].astype(jnp.float32).reshape(3, 3, cin, C1)
    w2 = params["w2"].astype(jnp.float32).reshape(3, 3, C1, C2)
    h = lax.conv_general_dilated(x, w1, (stride, stride), ((1, 1), (1, 1)),
                                 dimension_numbers=("NHWC", "HWIO", "NHWC"))
    h = lax.conv_general_dilated(h, w2, (stride, stride), ((1, 1), (1, 1)),
                                 dimension_numbers=("NHWC", "HWIO", "NHWC"))
    flat = h.reshape(B, -1)                               # (H, W, C) flatten order
    lin_w = params["wl"][:, :, :res].astype(jnp.float32).reshape(res * C2, res)
    lin_b = params["b"][0, :res]
    return jnp.maximum(flat @ lin_w + lin_b, 0.0)


if __name__ == "__main__":
    key = jax.random.PRNGKey(0)
    kp, kx = jax.random.split(key)

    B, H, W = 2, 16, 16
    INP_DIM, STRIDE = 8, 2

    def _conv_out(d):
        return (d + 2 - 3) // STRIDE + 1

    H2, W2 = _conv_out(_conv_out(H)), _conv_out(_conv_out(W))
    RESOLUTION = H2 * W2                    # Linear(20*resolution -> resolution)

    params = init_params(kp, INP_DIM, RESOLUTION)
    x = jax.random.normal(kx, (B, H, W, INP_DIM), jnp.float32)

    fwd = jax.jit(functools.partial(offset_regr_forward, stride=STRIDE))
    out = jax.block_until_ready(fwd(params, x))

    assert out.shape == (B, RESOLUTION), out.shape
    assert bool(jnp.isfinite(out).all())
    assert bool((out >= 0.0).all())         # final ReLU

    ref = jax.block_until_ready(ref_forward(params, x, stride=STRIDE))
    np.testing.assert_allclose(np.asarray(out), np.asarray(ref),
                               rtol=5e-2, atol=5e-3)

    print("KERNEL_OK")
</pallas_src>

<mosaic_0001>
module attributes {stable_mosaic.version = 11 : i64} {
  func.func @_fused_kernel(%arg0: i32, %arg1: memref<4x9x9x8xf32, #tpu.memory_space<vmem>>, %arg2: memref<9x8x100xbf16, #tpu.memory_space<vmem>>, %arg3: memref<9x100x20xbf16, #tpu.memory_space<vmem>>, %arg4: memref<16x20x128xbf16, #tpu.memory_space<vmem>>, %arg5: memref<1x128xf32, #tpu.memory_space<vmem>>, %arg6: memref<1x1x128xf32, #tpu.memory_space<vmem>>, %arg7: memref<10x10x100xf32, #tpu.memory_space<vmem>>) attributes {dimension_semantics = [#tpu.dimension_semantics<parallel>], iteration_bounds = array<i64: 2>, scalar_prefetch = 0 : i64, scratch_operands = 1 : i64, tpu.core_type = #tpu.core_type<tc>, window_params = [{transform_indices = @transform_0, window_bounds = array<i64: 4, 9, 9, 8>}, {pipeline_mode = #tpu.pipeline_mode<synchronous>, transform_indices = @transform_1, window_bounds = array<i64: 9, 8, 100>}, {pipeline_mode = #tpu.pipeline_mode<synchronous>, transform_indices = @transform_2, window_bounds = array<i64: 9, 100, 20>}, {pipeline_mode = #tpu.pipeline_mode<synchronous>, transform_indices = @transform_3, window_bounds = array<i64: 16, 20, 128>}, {pipeline_mode = #tpu.pipeline_mode<synchronous>, transform_indices = @transform_4, window_bounds = array<i64: 1, 128>}, {transform_indices = @transform_5, window_bounds = array<i64: 1, 1, 128>}]} {
    %c0 = arith.constant 0 : index
    %c0_0 = arith.constant 0 : index
    %c0_1 = arith.constant 0 : index
    %c0_2 = arith.constant 0 : index
    %0 = vector.load %arg1[%c0, %c0_0, %c0_1, %c0_2] : memref<4x9x9x8xf32, #tpu.memory_space<vmem>>, vector<1x9x9x8xf32>
    %1 = vector.shape_cast %0 : vector<1x9x9x8xf32> to vector<9x9x8xf32>
    %c1 = arith.constant 1 : index
    %c0_3 = arith.constant 0 : index
    %c0_4 = arith.constant 0 : index
    %c0_5 = arith.constant 0 : index
    %2 = vector.load %arg1[%c1, %c0_3, %c0_4, %c0_5] : memref<4x9x9x8xf32, #tpu.memory_space<vmem>>, vector<1x9x9x8xf32>
    %3 = vector.shape_cast %2 : vector<1x9x9x8xf32> to vector<9x9x8xf32>
    %c2 = arith.constant 2 : index
    %c0_6 = arith.constant 0 : index
    %c0_7 = arith.constant 0 : index
    %c0_8 = arith.constant 0 : index
    %4 = vector.load %arg1[%c2, %c0_6, %c0_7, %c0_8] : memref<4x9x9x8xf32, #tpu.memory_space<vmem>>, vector<1x9x9x8xf32>
    %5 = vector.shape_cast %4 : vector<1x9x9x8xf32> to vector<9x9x8xf32>
    %c3 = arith.constant 3 : index
    %c0_9 = arith.constant 0 : index
    %c0_10 = arith.constant 0 : index
    %c0_11 = arith.constant 0 : index
    %6 = vector.load %arg1[%c3, %c0_9, %c0_10, %c0_11] : memref<4x9x9x8xf32, #tpu.memory_space<vmem>>, vector<1x9x9x8xf32>
    %7 = vector.shape_cast %6 : vector<1x9x9x8xf32> to vector<9x9x8xf32>
    %cst = arith.constant 0.000000e+00 : f32
    %8 = vector.broadcast %cst : f32 to vector<64x100xf32>
    %9 = vector.extract_strided_slice %7 {offsets = [0, 0, 0], sizes = [8, 8, 8], strides = [1, 1, 1]} : vector<9x9x8xf32> to vector<8x8x8xf32>
    %10 = vector.shape_cast %9 : vector<8x8x8xf32> to vector<64x8xf32>
    %11 = arith.truncf %10 : vector<64x8xf32> to vector<64x8xbf16>
    %c0_12 = arith.constant 0 : index
    %c0_13 = arith.constant 0 : index
    %c0_14 = arith.constant 0 : index
    %12 = vector.load %arg2[%c0_12, %c0_13, %c0_14] : memref<9x8x100xbf16, #tpu.memory_space<vmem>>, vector<1x8x100xbf16>
    %13 = vector.shape_cast %12 : vector<1x8x100xbf16> to vector<8x100xbf16>
    %cst_15 = arith.constant dense<0.000000e+00> : vector<64x100xf32>
    %14 = tpu.matmul %11, %13, %cst_15 {dimension_numbers = #tpu.dot_dimension_numbers<[1], [0], [0], [1], [0, 0, 1, 1], [], []>} : vector<64x8xbf16>, vector<8x100xbf16>, vector<64x100xf32> -> vector<64x100xf32>
    %15 = arith.addf %8, %14 : vector<64x100xf32>
    %16 = vector.extract_strided_slice %5 {offsets = [0, 1, 0], sizes = [8, 8, 8], strides = [1, 1, 1]} : vector<9x9x8xf32> to vector<8x8x8xf32>
    %17 = vector.shape_cast %16 : vector<8x8x8xf32> to vector<64x8xf32>
    %18 = arith.truncf %17 : vector<64x8xf32> to vector<64x8xbf16>
    %c1_16 = arith.constant 1 : index
    %c0_17 = arith.constant 0 : index
    %c0_18 = arith.constant 0 : index
    %19 = vector.load %arg2[%c1_16, %c0_17, %c0_18] : memref<9x8x100xbf16, #tpu.memory_space<vmem>>, vector<1x8x100xbf16>
    %20 = vector.shape_cast %19 : vector<1x8x100xbf16> to vector<8x100xbf16>
    %cst_19 = arith.constant dense<0.000000e+00> : vector<64x100xf32>
    %21 = tpu.matmul %18, %20, %cst_19 {dimension_numbers = #tpu.dot_dimension_numbers<[1], [0], [0], [1], [0, 0, 1, 1], [], []>} : vector<64x8xbf16>, vector<8x100xbf16>, vector<64x100xf32> -> vector<64x100xf32>
    %22 = arith.addf %15, %21 : vector<64x100xf32>
    %23 = vector.extract_strided_slice %7 {offsets = [0, 1, 0], sizes = [8, 8, 8], strides = [1, 1, 1]} : vector<9x9x8xf32> to vector<8x8x8xf32>
    %24 = vector.shape_cast %23 : vector<8x8x8xf32> to vector<64x8xf32>
    %25 = arith.truncf %24 : vector<64x8xf32> to vector<64x8xbf16>
    %c2_20 = arith.constant 2 : index
    %c0_21 = arith.constant 0 : index
    %c0_22 = arith.constant 0 : index
    %26 = vector.load %arg2[%c2_20, %c0_21, %c0_22] : memref<9x8x100xbf16, #tpu.memory_space<vmem>>, vector<1x8x100xbf16>
    %27 = vector.shape_cast %26 : vector<1x8x100xbf16> to vector<8x100xbf16>
    %cst_23 = arith.constant dense<0.000000e+00> : vector<64x100xf32>
    %28 = tpu.matmul %25, %27, %cst_23 {dimension_numbers = #tpu.dot_dimension_numbers<[1], [0], [0], [1], [0, 0, 1, 1], [], []>} : vector<64x8xbf16>, vector<8x100xbf16>, vector<64x100xf32> -> vector<64x100xf32>
    %29 = arith.addf %22, %28 : vector<64x100xf32>
    %30 = vector.extract_strided_slice %3 {offsets = [1, 0, 0], sizes = [8, 8, 8], strides = [1, 1, 1]} : vector<9x9x8xf32> to vector<8x8x8xf32>
    %31 = vector.shape_cast %30 : vector<8x8x8xf32> to vector<64x8xf32>
    %32 = arith.truncf %31 : vector<64x8xf32> to vector<64x8xbf16>
    %c3_24 = arith.constant 3 : index
    %c0_25 = arith.constant 0 : index
    %c0_26 = arith.constant 0 : index
    %33 = vector.load %arg2[%c3_24, %c0_25, %c0_26] : memref<9x8x100xbf16, #tpu.memory_space<vmem>>, vector<1x8x100xbf16>
    %34 = vector.shape_cast %33 : vector<1x8x100xbf16> to vector<8x100xbf16>
    %cst_27 = arith.constant dense<0.000000e+00> : vector<64x100xf32>
    %35 = tpu.matmul %32, %34, %cst_27 {dimension_numbers = #tpu.dot_dimension_numbers<[1], [0], [0], [1], [0, 0, 1, 1], [], []>} : vector<64x8xbf16>, vector<8x100xbf16>, vector<64x100xf32> -> vector<64x100xf32>
    %36 = arith.addf %29, %35 : vector<64x100xf32>
    %37 = vector.extract_strided_slice %1 {offsets = [1, 1, 0], sizes = [8, 8, 8], strides = [1, 1, 1]} : vector<9x9x8xf32> to vector<8x8x8xf32>
    %38 = vector.shape_cast %37 : vector<8x8x8xf32> to vector<64x8xf32>
    %39 = arith.truncf %38 : vector<64x8xf32> to vector<64x8xbf16>
    %c4 = arith.constant 4 : index
    %c0_28 = arith.constant 0 : index
    %c0_29 = arith.constant 0 : index
    %40 = vector.load %arg2[%c4, %c0_28, %c0_29] : memref<9x8x100xbf16, #tpu.memory_space<vmem>>, vector<1x8x100xbf16>
    %41 = vector.shape_cast %40 : vector<1x8x100xbf16> to vector<8x100xbf16>
    %cst_30 = arith.constant dense<0.000000e+00> : vector<64x100xf32>
    %42 = tpu.matmul %39, %41, %cst_30 {dimension_numbers = #tpu.dot_dimension_numbers<[1], [0], [0], [1], [0, 0, 1, 1], [], []>} : vector<64x8xbf16>, vector<8x100xbf16>, vector<64x100xf32> -> vector<64x100xf32>
    %43 = arith.addf %36, %42 : vector<64x100xf32>
    %44 = vector.extract_strided_slice %3 {offsets = [1, 1, 0], sizes = [8, 8, 8], strides = [1, 1, 1]} : vector<9x9x8xf32> to vector<8x8x8xf32>
    %45 = vector.shape_cast %44 : vector<8x8x8xf32> to vector<64x8xf32>
    %46 = arith.truncf %45 : vector<64x8xf32> to vector<64x8xbf16>
    %c5 = arith.constant 5 : index
    %c0_31 = arith.constant 0 : index
    %c0_32 = arith.constant 0 : index
    %47 = vector.load %arg2[%c5, %c0_31, %c0_32] : memref<9x8x100xbf16, #tpu.memory_space<vmem>>, vector<1x8x100xbf16>
    %48 = vector.shape_cast %47 : vector<1x8x100xbf16> to vector<8x100xbf16>
    %cst_33 = arith.constant dense<0.000000e+00> : vector<64x100xf32>
    %49 = tpu.matmul %46, %48, %cst_33 {dimension_numbers = #tpu.dot_dimension_numbers<[1], [0], [0], [1], [0, 0, 1, 1], [], []>} : vector<64x8xbf16>, vector<8x100xbf16>, vector<64x100xf32> -> vector<64x100xf32>
    %50 = arith.addf %43, %49 : vector<64x100xf32>
    %51 = vector.extract_strided_slice %7 {offsets = [1, 0, 0], sizes = [8, 8, 8], strides = [1, 1, 1]} : vector<9x9x8xf32> to vector<8x8x8xf32>
    %52 = vector.shape_cast %51 : vector<8x8x8xf32> to vector<64x8xf32>
    %53 = arith.truncf %52 : vector<64x8xf32> to vector<64x8xbf16>
    %c6 = arith.constant 6 : index
    %c0_34 = arith.constant 0 : index
    %c0_35 = arith.constant 0 : index
    %54 = vector.load %arg2[%c6, %c0_34, %c0_35] : memref<9x8x100xbf16, #tpu.memory_space<vmem>>, vector<1x8x100xbf16>
    %55 = vector.shape_cast %54 : vector<1x8x100xbf16> to vector<8x100xbf16>
    %cst_36 = arith.constant dense<0.000000e+00> : vector<64x100xf32>
    %56 = tpu.matmul %53, %55, %cst_36 {dimension_numbers = #tpu.dot_dimension_numbers<[1], [0], [0], [1], [0, 0, 1, 1], [], []>} : vector<64x8xbf16>, vector<8x100xbf16>, vector<64x100xf32> -> vector<64x100xf32>
    %57 = arith.addf %50, %56 : vector<64x100xf32>
    %58 = vector.extract_strided_slice %5 {offsets = [1, 1, 0], sizes = [8, 8, 8], strides = [1, 1, 1]} : vector<9x9x8xf32> to vector<8x8x8xf32>
    %59 = vector.shape_cast %58 : vector<8x8x8xf32> to vector<64x8xf32>
    %60 = arith.truncf %59 : vector<64x8xf32> to vector<64x8xbf16>
    %c7 = arith.constant 7 : index
    %c0_37 = arith.constant 0 : index
    %c0_38 = arith.constant 0 : index
    %61 = vector.load %arg2[%c7, %c0_37, %c0_38] : memref<9x8x100xbf16, #tpu.memory_space<vmem>>, vector<1x8x100xbf16>
    %62 = vector.shape_cast %61 : vector<1x8x100xbf16> to vector<8x100xbf16>
    %cst_39 = arith.constant dense<0.000000e+00> : vector<64x100xf32>
    %63 = tpu.matmul %60, %62, %cst_39 {dimension_numbers = #tpu.dot_dimension_numbers<[1], [0], [0], [1], [0, 0, 1, 1], [], []>} : vector<64x8xbf16>, vector<8x100xbf16>, vector<64x100xf32> -> vector<64x100xf32>
    %64 = arith.addf %57, %63 : vector<64x100xf32>
    %65 = vector.extract_strided_slice %7 {offsets = [1, 1, 0], sizes = [8, 8, 8], strides = [1, 1, 1]} : vector<9x9x8xf32> to vector<8x8x8xf32>
    %66 = vector.shape_cast %65 : vector<8x8x8xf32> to vector<64x8xf32>
    %67 = arith.truncf %66 : vector<64x8xf32> to vector<64x8xbf16>
    %c8 = arith.constant 8 : index
    %c0_40 = arith.constant 0 : index
    %c0_41 = arith.constant 0 : index
    %68 = vector.load %arg2[%c8, %c0_40, %c0_41] : memref<9x8x100xbf16, #tpu.memory_space<vmem>>, vector<1x8x100xbf16>
    %69 = vector.shape_cast %68 : vector<1x8x100xbf16> to vector<8x100xbf16>
    %cst_42 = arith.constant dense<0.000000e+00> : vector<64x100xf32>
    %70 = tpu.matmul %67, %69, %cst_42 {dimension_numbers = #tpu.dot_dimension_numbers<[1], [0], [0], [1], [0, 0, 1, 1], [], []>} : vector<64x8xbf16>, vector<8x100xbf16>, vector<64x100xf32> -> vector<64x100xf32>
    %71 = arith.addf %64, %70 : vector<64x100xf32>
    %cst_43 = arith.constant 0.000000e+00 : f32
    %72 = vector.broadcast %cst_43 : f32 to vector<10x10x100xf32>
    %c0_44 = arith.constant 0 : index
    %c0_45 = arith.constant 0 : index
    %c0_46 = arith.constant 0 : index
    %73 = vector.load %arg7[%c0_44, %c0_45, %c0_46] : memref<10x10x100xf32, #tpu.memory_space<vmem>>, vector<10x10x100xf32>
    tpu.vector_store %arg7[%c0_44, %c0_45, %c0_46], %72 {strides = array<i32>} : memref<10x10x100xf32, #tpu.memory_space<vmem>>, vector<10x10x100xf32>,
    %74 = vector.shape_cast %71 : vector<64x100xf32> to vector<8x8x100xf32>
    %c1_47 = arith.constant 1 : index
    %c1_48 = arith.constant 1 : index
    %c0_49 = arith.constant 0 : index
    %75 = vector.load %arg7[%c1_47, %c1_48, %c0_49] : memref<10x10x100xf32, #tpu.memory_space<vmem>>, vector<8x8x100xf32>
    tpu.vector_store %arg7[%c1_47, %c1_48, %c0_49], %74 {strides = array<i32>} : memref<10x10x100xf32, #tpu.memory_space<vmem>>, vector<8x8x100xf32>,
    %cst_50 = arith.constant 0.000000e+00 : f32
    %76 = vector.broadcast %cst_50 : f32 to vector<64x20xf32>
    %c0_51 = arith.constant 0 : index
    %c0_52 = arith.constant 0 : index
    %c0_53 = arith.constant 0 : index
    %77 = vector.load %arg7[%c0_51, %c0_52, %c0_53] : memref<10x10x100xf32, #tpu.memory_space<vmem>>, vector<8x8x100xf32>
    %78 = vector.shape_cast %77 : vector<8x8x100xf32> to vector<64x100xf32>
    %79 = arith.truncf %78 : vector<64x100xf32> to vector<64x100xbf16>
    %c0_54 = arith.constant 0 : index
    %c0_55 = arith.constant 0 : index
    %c0_56 = arith.constant 0 : index
    %80 = vector.load %arg3[%c0_54, %c0_55, %c0_56] : memref<9x100x20xbf16, #tpu.memory_space<vmem>>, vector<1x100x20xbf16>
    %81 = vector.shape_cast %80 : vector<1x100x20xbf16> to vector<100x20xbf16>
    %cst_57 = arith.constant dense<0.000000e+00> : vector<64x20xf32>
    %82 = tpu.matmul %79, %81, %cst_57 {dimension_numbers = #tpu.dot_dimension_numbers<[1], [0], [0], [1], [0, 0, 1, 1], [], []>} : vector<64x100xbf16>, vector<100x20xbf16>, vector<64x20xf32> -> vector<64x20xf32>
    %83 = arith.addf %76, %82 : vector<64x20xf32>
    %c0_58 = arith.constant 0 : index
    %c1_59 = arith.constant 1 : index
    %c0_60 = arith.constant 0 : index
    %84 = vector.load %arg7[%c0_58, %c1_59, %c0_60] : memref<10x10x100xf32, #tpu.memory_space<vmem>>, vector<8x8x100xf32>
    %85 = vector.shape_cast %84 : vector<8x8x100xf32> to vector<64x100xf32>
    %86 = arith.truncf %85 : vector<64x100xf32> to vector<64x100xbf16>
    %c1_61 = arith.constant 1 : index
    %c0_62 = arith.constant 0 : index
    %c0_63 = arith.constant 0 : index
    %87 = vector.load %arg3[%c1_61, %c0_62, %c0_63] : memref<9x100x20xbf16, #tpu.memory_space<vmem>>, vector<1x100x20xbf16>
    %88 = vector.shape_cast %87 : vector<1x100x20xbf16> to vector<100x20xbf16>
    %cst_64 = arith.constant dense<0.000000e+00> : vector<64x20xf32>
    %89 = tpu.matmul %86, %88, %cst_64 {dimension_numbers = #tpu.dot_dimension_numbers<[1], [0], [0], [1], [0, 0, 1, 1], [], []>} : vector<64x100xbf16>, vector<100x20xbf16>, vector<64x20xf32> -> vector<64x20xf32>
    %90 = arith.addf %83, %89 : vector<64x20xf32>
    %c0_65 = arith.constant 0 : index
    %c2_66 = arith.constant 2 : index
    %c0_67 = arith.constant 0 : index
    %91 = vector.load %arg7[%c0_65, %c2_66, %c0_67] : memref<10x10x100xf32, #tpu.memory_space<vmem>>, vector<8x8x100xf32>
    %92 = vector.shape_cast %91 : vector<8x8x100xf32> to vector<64x100xf32>
    %93 = arith.truncf %92 : vector<64x100xf32> to vector<64x100xbf16>
    %c2_68 = arith.constant 2 : index
    %c0_69 = arith.constant 0 : index
    %c0_70 = arith.constant 0 : index
    %94 = vector.load %arg3[%c2_68, %c0_69, %c0_70] : memref<9x100x20xbf16, #tpu.memory_space<vmem>>, vector<1x100x20xbf16>
    %95 = vector.shape_cast %94 : vector<1x100x20xbf16> to vector<100x20xbf16>
    %cst_71 = arith.constant dense<0.000000e+00> : vector<64x20xf32>
    %96 = tpu.matmul %93, %95, %cst_71 {dimension_numbers = #tpu.dot_dimension_numbers<[1], [0], [0], [1], [0, 0, 1, 1], [], []>} : vector<64x100xbf16>, vector<100x20xbf16>, vector<64x20xf32> -> vector<64x20xf32>
    %97 = arith.addf %90, %96 : vector<64x20xf32>
    %c1_72 = arith.constant 1 : index
    %c0_73 = arith.constant 0 : index
    %c0_74 = arith.constant 0 : index
    %98 = vector.load %arg7[%c1_72, %c0_73, %c0_74] : memref<10x10x100xf32, #tpu.memory_space<vmem>>, vector<8x8x100xf32>
    %99 = vector.shape_cast %98 : vector<8x8x100xf32> to vector<64x100xf32>
    %100 = arith.truncf %99 : vector<64x100xf32> to vector<64x100xbf16>
    %c3_75 = arith.constant 3 : index
    %c0_76 = arith.constant 0 : index
    %c0_77 = arith.constant 0 : index
    %101 = vector.load %arg3[%c3_75, %c0_76, %c0_77] : memref<9x100x20xbf16, #tpu.memory_space<vmem>>, vector<1x100x20xbf16>
    %102 = vector.shape_cast %101 : vector<1x100x20xbf16> to vector<100x20xbf16>
    %cst_78 = arith.constant dense<0.000000e+00> : vector<64x20xf32>
    %103 = tpu.matmul %100, %102, %cst_78 {dimension_numbers = #tpu.dot_dimension_numbers<[1], [0], [0], [1], [0, 0, 1, 1], [], []>} : vector<64x100xbf16>, vector<100x20xbf16>, vector<64x20xf32> -> vector<64x20xf32>
    %104 = arith.addf %97, %103 : vector<64x20xf32>
    %c1_79 = arith.constant 1 : index
    %c1_80 = arith.constant 1 : index
    %c0_81 = arith.constant 0 : index
    %105 = vector.load %arg7[%c1_79, %c1_80, %c0_81] : memref<10x10x100xf32, #tpu.memory_space<vmem>>, vector<8x8x100xf32>
    %106 = vector.shape_cast %105 : vector<8x8x100xf32> to vector<64x100xf32>
    %107 = arith.truncf %106 : vector<64x100xf32> to vector<64x100xbf16>
    %c4_82 = arith.constant 4 : index
    %c0_83 = arith.constant 0 : index
    %c0_84 = arith.constant 0 : index
    %108 = vector.load %arg3[%c4_82, %c0_83, %c0_84] : memref<9x100x20xbf16, #tpu.memory_space<vmem>>, vector<1x100x20xbf16>
    %109 = vector.shape_cast %108 : vector<1x100x20xbf16> to vector<100x20xbf16>
    %cst_85 = arith.constant dense<0.000000e+00> : vector<64x20xf32>
    %110 = tpu.matmul %107, %109, %cst_85 {dimension_numbers = #tpu.dot_dimension_numbers<[1], [0], [0], [1], [0, 0, 1, 1], [], []>} : vector<64x100xbf16>, vector<100x20xbf16>, vector<64x20xf32> -> vector<64x20xf32>
    %111 = arith.addf %104, %110 : vector<64x20xf32>
    %c1_86 = arith.constant 1 : index
    %c2_87 = arith.constant 2 : index
    %c0_88 = arith.constant 0 : index
    %112 = vector.load %arg7[%c1_86, %c2_87, %c0_88] : memref<10x10x100xf32, #tpu.memory_space<vmem>>, vector<8x8x100xf32>
    %113 = vector.shape_cast %112 : vector<8x8x100xf32> to vector<64x100xf32>
    %114 = arith.truncf %113 : vector<64x100xf32> to vector<64x100xbf16>
    %c5_89 = arith.constant 5 : index
    %c0_90 = arith.constant 0 : index
    %c0_91 = arith.constant 0 : index
    %115 = vector.load %arg3[%c5_89, %c0_90, %c0_91] : memref<9x100x20xbf16, #tpu.memory_space<vmem>>, vector<1x100x20xbf16>
    %116 = vector.shape_cast %115 : vector<1x100x20xbf16> to vector<100x20xbf16>
    %cst_92 = arith.constant dense<0.000000e+00> : vector<64x20xf32>
    %117 = tpu.matmul %114, %116, %cst_92 {dimension_numbers = #tpu.dot_dimension_numbers<[1], [0], [0], [1], [0, 0, 1, 1], [], []>} : vector<64x100xbf16>, vector<100x20xbf16>, vector<64x20xf32> -> vector<64x20xf32>
    %118 = arith.addf %111, %117 : vector<64x20xf32>
    %c2_93 = arith.constant 2 : index
    %c0_94 = arith.constant 0 : index
    %c0_95 = arith.constant 0 : index
    %119 = vector.load %arg7[%c2_93, %c0_94, %c0_95] : memref<10x10x100xf32, #tpu.memory_space<vmem>>, vector<8x8x100xf32>
    %120 = vector.shape_cast %119 : vector<8x8x100xf32> to vector<64x100xf32>
    %121 = arith.truncf %120 : vector<64x100xf32> to vector<64x100xbf16>
    %c6_96 = arith.constant 6 : index
    %c0_97 = arith.constant 0 : index
    %c0_98 = arith.constant 0 : index
    %122 = vector.load %arg3[%c6_96, %c0_97, %c0_98] : memref<9x100x20xbf16, #tpu.memory_space<vmem>>, vector<1x100x20xbf16>
    %123 = vector.shape_cast %122 : vector<1x100x20xbf16> to vector<100x20xbf16>
    %cst_99 = arith.constant dense<0.000000e+00> : vector<64x20xf32>
    %124 = tpu.matmul %121, %123, %cst_99 {dimension_numbers = #tpu.dot_dimension_numbers<[1], [0], [0], [1], [0, 0, 1, 1], [], []>} : vector<64x100xbf16>, vector<100x20xbf16>, vector<64x20xf32> -> vector<64x20xf32>
    %125 = arith.addf %118, %124 : vector<64x20xf32>
    %c2_100 = arith.constant 2 : index
    %c1_101 = arith.constant 1 : index
    %c0_102 = arith.constant 0 : index
    %126 = vector.load %arg7[%c2_100, %c1_101, %c0_102] : memref<10x10x100xf32, #tpu.memory_space<vmem>>, vector<8x8x100xf32>
    %127 = vector.shape_cast %126 : vector<8x8x100xf32> to vector<64x100xf32>
    %128 = arith.truncf %127 : vector<64x100xf32> to vector<64x100xbf16>
    %c7_103 = arith.constant 7 : index
    %c0_104 = arith.constant 0 : index
    %c0_105 = arith.constant 0 : index
    %129 = vector.load %arg3[%c7_103, %c0_104, %c0_105] : memref<9x100x20xbf16, #tpu.memory_space<vmem>>, vector<1x100x20xbf16>
    %130 = vector.shape_cast %129 : vector<1x100x20xbf16> to vector<100x20xbf16>
    %cst_106 = arith.constant dense<0.000000e+00> : vector<64x20xf32>
    %131 = tpu.matmul %128, %130, %cst_106 {dimension_numbers = #tpu.dot_dimension_numbers<[1], [0], [0], [1], [0, 0, 1, 1], [], []>} : vector<64x100xbf16>, vector<100x20xbf16>, vector<64x20xf32> -> vector<64x20xf32>
    %132 = arith.addf %125, %131 : vector<64x20xf32>
    %c2_107 = arith.constant 2 : index
    %c2_108 = arith.constant 2 : index
    %c0_109 = arith.constant 0 : index
    %133 = vector.load %arg7[%c2_107, %c2_108, %c0_109] : memref<10x10x100xf32, #tpu.memory_space<vmem>>, vector<8x8x100xf32>
    %134 = vector.shape_cast %133 : vector<8x8x100xf32> to vector<64x100xf32>
    %135 = arith.truncf %134 : vector<64x100xf32> to vector<64x100xbf16>
    %c8_110 = arith.constant 8 : index
    %c0_111 = arith.constant 0 : index
    %c0_112 = arith.constant 0 : index
    %136 = vector.load %arg3[%c8_110, %c0_111, %c0_112] : memref<9x100x20xbf16, #tpu.memory_space<vmem>>, vector<1x100x20xbf16>
    %137 = vector.shape_cast %136 : vector<1x100x20xbf16> to vector<100x20xbf16>
    %cst_113 = arith.constant dense<0.000000e+00> : vector<64x20xf32>
    %138 = tpu.matmul %135, %137, %cst_113 {dimension_numbers = #tpu.dot_dimension_numbers<[1], [0], [0], [1], [0, 0, 1, 1], [], []>} : vector<64x100xbf16>, vector<100x20xbf16>, vector<64x20xf32> -> vector<64x20xf32>
    %139 = arith.addf %132, %138 : vector<64x20xf32>
    %c0_114 = arith.constant 0 : index
    %c0_115 = arith.constant 0 : index
    %140 = vector.load %arg5[%c0_114, %c0_115] : memref<1x128xf32, #tpu.memory_space<vmem>>, vector<1x128xf32>
    %141 = vector.extract_strided_slice %139 {offsets = [0, 0], sizes = [1, 20], strides = [1, 1]} : vector<64x20xf32> to vector<1x20xf32>
    %142 = arith.truncf %141 : vector<1x20xf32> to vector<1x20xbf16>
    %c0_116 = arith.constant 0 : index
    %c0_117 = arith.constant 0 : index
    %c0_118 = arith.constant 0 : index
    %143 = vector.load %arg4[%c0_116, %c0_117, %c0_118] : memref<16x20x128xbf16, #tpu.memory_space<vmem>>, vector<1x20x128xbf16>
    %144 = vector.shape_cast %143 : vector<1x20x128xbf16> to vector<20x128xbf16>
    %cst_119 = arith.constant dense<0.000000e+00> : vector<1x128xf32>
    %145 = tpu.matmul %142, %144, %cst_119 {dimension_numbers = #tpu.dot_dimension_numbers<[1], [0], [0], [1], [0, 0, 1, 1], [], []>} : vector<1x20xbf16>, vector<20x128xbf16>, vector<1x128xf32> -> vector<1x128xf32>
    %146 = arith.addf %140, %145 : vector<1x128xf32>
    %147 = vector.extract_strided_slice %139 {offsets = [2, 0], sizes = [1, 20], strides = [1, 1]} : vector<64x20xf32> to vector<1x20xf32>
    %148 = arith.truncf %147 : vector<1x20xf32> to vector<1x20xbf16>
    %c1_120 = arith.constant 1 : index
    %c0_121 = arith.constant 0 : index
    %c0_122 = arith.constant 0 : index
    %149 = vector.load %arg4[%c1_120, %c0_121, %c0_122] : memref<16x20x128xbf16, #tpu.memory_space<vmem>>, vector<1x20x128xbf16>
    %150 = vector.shape_cast %149 : vector<1x20x128xbf16> to vector<20x128xbf16>
    %cst_123 = arith.constant dense<0.000000e+00> : vector<1x128xf32>
    %151 = tpu.matmul %148, %150, %cst_123 {dimension_numbers = #tpu.dot_dimension_numbers<[1], [0], [0], [1], [0, 0, 1, 1], [], []>} : vector<1x20xbf16>, vector<20x128xbf16>, vector<1x128xf32> -> vector<1x128xf32>
    %152 = arith.addf %146, %151 : vector<1x128xf32>
    %153 = vector.extract_strided_slice %139 {offsets = [4, 0], sizes = [1, 20], strides = [1, 1]} : vector<64x20xf32> to vector<1x20xf32>
    %154 = arith.truncf %153 : vector<1x20xf32> to vector<1x20xbf16>
    %c2_124 = arith.constant 2 : index
    %c0_125 = arith.constant 0 : index
    %c0_126 = arith.constant 0 : index
    %155 = vector.load %arg4[%c2_124, %c0_125, %c0_126] : memref<16x20x128xbf16, #tpu.memory_space<vmem>>, vector<1x20x128xbf16>
    %156 = vector.shape_cast %155 : vector<1x20x128xbf16> to vector<20x128xbf16>
    %cst_127 = arith.constant dense<0.000000e+00> : vector<1x128xf32>
    %157 = tpu.matmul %154, %156, %cst_127 {dimension_numbers = #tpu.dot_dimension_numbers<[1], [0], [0], [1], [0, 0, 1, 1], [], []>} : vector<1x20xbf16>, vector<20x128xbf16>, vector<1x128xf32> -> vector<1x128xf32>
    %158 = arith.addf %152, %157 : vector<1x128xf32>
    %159 = vector.extract_strided_slice %139 {offsets = [6, 0], sizes = [1, 20], strides = [1, 1]} : vector<64x20xf32> to vector<1x20xf32>
    %160 = arith.truncf %159 : vector<1x20xf32> to vector<1x20xbf16>
    %c3_128 = arith.constant 3 : index
    %c0_129 = arith.constant 0 : index
    %c0_130 = arith.constant 0 : index
    %161 = vector.load %arg4[%c3_128, %c0_129, %c0_130] : memref<16x20x128xbf16, #tpu.memory_space<vmem>>, vector<1x20x128xbf16>
    %162 = vector.shape_cast %161 : vector<1x20x128xbf16> to vector<20x128xbf16>
    %cst_131 = arith.constant dense<0.000000e+00> : vector<1x128xf32>
    %163 = tpu.matmul %160, %162, %cst_131 {dimension_numbers = #tpu.dot_dimension_numbers<[1], [0], [0], [1], [0, 0, 1, 1], [], []>} : vector<1x20xbf16>, vector<20x128xbf16>, vector<1x128xf32> -> vector<1x128xf32>
    %164 = arith.addf %158, %163 : vector<1x128xf32>
    %165 = vector.extract_strided_slice %139 {offsets = [16, 0], sizes = [1, 20], strides = [1, 1]} : vector<64x20xf32> to vector<1x20xf32>
    %166 = arith.truncf %165 : vector<1x20xf32> to vector<1x20xbf16>
    %c4_132 = arith.constant 4 : index
    %c0_133 = arith.constant 0 : index
    %c0_134 = arith.constant 0 : index
    %167 = vector.load %arg4[%c4_132, %c0_133, %c0_134] : memref<16x20x128xbf16, #tpu.memory_space<vmem>>, vector<1x20x128xbf16>
    %168 = vector.shape_cast %167 : vector<1x20x128xbf16> to vector<20x128xbf16>
    %cst_135 = arith.constant dense<0.000000e+00> : vector<1x128xf32>
    %169 = tpu.matmul %166, %168, %cst_135 {dimension_numbers = #tpu.dot_dimension_numbers<[1], [0], [0], [1], [0, 0, 1, 1], [], []>} : vector<1x20xbf16>, vector<20x128xbf16>, vector<1x128xf32> -> vector<1x128xf32>
    %170 = arith.addf %164, %169 : vector<1x128xf32>
    %171 = vector.extract_strided_slice %139 {offsets = [18, 0], sizes = [1, 20], strides = [1, 1]} : vector<64x20xf32> to vector<1x20xf32>
    %172 = arith.truncf %171 : vector<1x20xf32> to vector<1x20xbf16>
    %c5_136 = arith.constant 5 : index
    %c0_137 = arith.constant 0 : index
    %c0_138 = arith.constant 0 : index
    %173 = vector.load %arg4[%c5_136, %c0_137, %c0_138] : memref<16x20x128xbf16, #tpu.memory_space<vmem>>, vector<1x20x128xbf16>
    %174 = vector.shape_cast %173 : vector<1x20x128xbf16> to vector<20x128xbf16>
    %cst_139 = arith.constant dense<0.000000e+00> : vector<1x128xf32>
    %175 = tpu.matmul %172, %174, %cst_139 {dimension_numbers = #tpu.dot_dimension_numbers<[1], [0], [0], [1], [0, 0, 1, 1], [], []>} : vector<1x20xbf16>, vector<20x128xbf16>, vector<1x128xf32> -> vector<1x128xf32>
    %176 = arith.addf %170, %175 : vector<1x128xf32>
    %177 = vector.extract_strided_slice %139 {offsets = [20, 0], sizes = [1, 20], strides = [1, 1]} : vector<64x20xf32> to vector<1x20xf32>
    %178 = arith.truncf %177 : vector<1x20xf32> to vector<1x20xbf16>
    %c6_140 = arith.constant 6 : index
    %c0_141 = arith.constant 0 : index
    %c0_142 = arith.constant 0 : index
    %179 = vector.load %arg4[%c6_140, %c0_141, %c0_142] : memref<16x20x128xbf16, #tpu.memory_space<vmem>>, vector<1x20x128xbf16>
    %180 = vector.shape_cast %179 : vector<1x20x128xbf16> to vector<20x128xbf16>
    %cst_143 = arith.constant dense<0.000000e+00> : vector<1x128xf32>
    %181 = tpu.matmul %178, %180, %cst_143 {dimension_numbers = #tpu.dot_dimension_numbers<[1], [0], [0], [1], [0, 0, 1, 1], [], []>} : vector<1x20xbf16>, vector<20x128xbf16>, vector<1x128xf32> -> vector<1x128xf32>
    %182 = arith.addf %176, %181 : vector<1x128xf32>
    %183 = vector.extract_strided_slice %139 {offsets = [22, 0], sizes = [1, 20], strides = [1, 1]} : vector<64x20xf32> to vector<1x20xf32>
    %184 = arith.truncf %183 : vector<1x20xf32> to vector<1x20xbf16>
    %c7_144 = arith.constant 7 : index
    %c0_145 = arith.constant 0 : index
    %c0_146 = arith.constant 0 : index
    %185 = vector.load %arg4[%c7_144, %c0_145, %c0_146] : memref<16x20x128xbf16, #tpu.memory_space<vmem>>, vector<1x20x128xbf16>
    %186 = vector.shape_cast %185 : vector<1x20x128xbf16> to vector<20x128xbf16>
    %cst_147 = arith.constant dense<0.000000e+00> : vector<1x128xf32>
    %187 = tpu.matmul %184, %186, %cst_147 {dimension_numbers = #tpu.dot_dimension_numbers<[1], [0], [0], [1], [0, 0, 1, 1], [], []>} : vector<1x20xbf16>, vector<20x128xbf16>, vector<1x128xf32> -> vector<1x128xf32>
    %188 = arith.addf %182, %187 : vector<1x128xf32>
    %189 = vector.extract_strided_slice %139 {offsets = [32, 0], sizes = [1, 20], strides = [1, 1]} : vector<64x20xf32> to vector<1x20xf32>
    %190 = arith.truncf %189 : vector<1x20xf32> to vector<1x20xbf16>
    %c8_148 = arith.constant 8 : index
    %c0_149 = arith.constant 0 : index
    %c0_150 = arith.constant 0 : index
    %191 = vector.load %arg4[%c8_148, %c0_149, %c0_150] : memref<16x20x128xbf16, #tpu.memory_space<vmem>>, vector<1x20x128xbf16>
    %192 = vector.shape_cast %191 : vector<1x20x128xbf16> to vector<20x128xbf16>
    %cst_151 = arith.constant dense<0.000000e+00> : vector<1x128xf32>
    %193 = tpu.matmul %190, %192, %cst_151 {dimension_numbers = #tpu.dot_dimension_numbers<[1], [0], [0], [1], [0, 0, 1, 1], [], []>} : vector<1x20xbf16>, vector<20x128xbf16>, vector<1x128xf32> -> vector<1x128xf32>
    %194 = arith.addf %188, %193 : vector<1x128xf32>
    %195 = vector.extract_strided_slice %139 {offsets = [34, 0], sizes = [1, 20], strides = [1, 1]} : vector<64x20xf32> to vector<1x20xf32>
    %196 = arith.truncf %195 : vector<1x20xf32> to vector<1x20xbf16>
    %c9 = arith.constant 9 : index
    %c0_152 = arith.constant 0 : index
    %c0_153 = arith.constant 0 : index
    %197 = vector.load %arg4[%c9, %c0_152, %c0_153] : memref<16x20x128xbf16, #tpu.memory_space<vmem>>, vector<1x20x128xbf16>
    %198 = vector.shape_cast %197 : vector<1x20x128xbf16> to vector<20x128xbf16>
    %cst_154 = arith.constant dense<0.000000e+00> : vector<1x128xf32>
    %199 = tpu.matmul %196, %198, %cst_154 {dimension_numbers = #tpu.dot_dimension_numbers<[1], [0], [0], [1], [0, 0, 1, 1], [], []>} : vector<1x20xbf16>, vector<20x128xbf16>, vector<1x128xf32> -> vector<1x128xf32>
    %200 = arith.addf %194, %199 : vector<1x128xf32>
    %201 = vector.extract_strided_slice %139 {offsets = [36, 0], sizes = [1, 20], strides = [1, 1]} : vector<64x20xf32> to vector<1x20xf32>
    %202 = arith.truncf %201 : vector<1x20xf32> to vector<1x20xbf16>
    %c10 = arith.constant 10 : index
    %c0_155 = arith.constant 0 : index
    %c0_156 = arith.constant 0 : index
    %203 = vector.load %arg4[%c10, %c0_155, %c0_156] : memref<16x20x128xbf16, #tpu.memory_space<vmem>>, vector<1x20x128xbf16>
    %204 = vector.shape_cast %203 : vector<1x20x128xbf16> to vector<20x128xbf16>
    %cst_157 = arith.constant dense<0.000000e+00> : vector<1x128xf32>
    %205 = tpu.matmul %202, %204, %cst_157 {dimension_numbers = #tpu.dot_dimension_numbers<[1], [0], [0], [1], [0, 0, 1, 1], [], []>} : vector<1x20xbf16>, vector<20x128xbf16>, vector<1x128xf32> -> vector<1x128xf32>
    %206 = arith.addf %200, %205 : vector<1x128xf32>
    %207 = vector.extract_strided_slice %139 {offsets = [38, 0], sizes = [1, 20], strides = [1, 1]} : vector<64x20xf32> to vector<1x20xf32>
    %208 = arith.truncf %207 : vector<1x20xf32> to vector<1x20xbf16>
    %c11 = arith.constant 11 : index
    %c0_158 = arith.constant 0 : index
    %c0_159 = arith.constant 0 : index
    %209 = vector.load %arg4[%c11, %c0_158, %c0_159] : memref<16x20x128xbf16, #tpu.memory_space<vmem>>, vector<1x20x128xbf16>
    %210 = vector.shape_cast %209 : vector<1x20x128xbf16> to vector<20x128xbf16>
    %cst_160 = arith.constant dense<0.000000e+00> : vector<1x128xf32>
    %211 = tpu.matmul %208, %210, %cst_160 {dimension_numbers = #tpu.dot_dimension_numbers<[1], [0], [0], [1], [0, 0, 1, 1], [], []>} : vector<1x20xbf16>, vector<20x128xbf16>, vector<1x128xf32> -> vector<1x128xf32>
    %212 = arith.addf %206, %211 : vector<1x128xf32>
    %213 = vector.extract_strided_slice %139 {offsets = [48, 0], sizes = [1, 20], strides = [1, 1]} : vector<64x20xf32> to vector<1x20xf32>
    %214 = arith.truncf %213 : vector<1x20xf32> to vector<1x20xbf16>
    %c12 = arith.constant 12 : index
    %c0_161 = arith.constant 0 : index
    %c0_162 = arith.constant 0 : index
    %215 = vector.load %arg4[%c12, %c0_161, %c0_162] : memref<16x20x128xbf16, #tpu.memory_space<vmem>>, vector<1x20x128xbf16>
    %216 = vector.shape_cast %215 : vector<1x20x128xbf16> to vector<20x128xbf16>
    %cst_163 = arith.constant dense<0.000000e+00> : vector<1x128xf32>
    %217 = tpu.matmul %214, %216, %cst_163 {dimension_numbers = #tpu.dot_dimension_numbers<[1], [0], [0], [1], [0, 0, 1, 1], [], []>} : vector<1x20xbf16>, vector<20x128xbf16>, vector<1x128xf32> -> vector<1x128xf32>
    %218 = arith.addf %212, %217 : vector<1x128xf32>
    %219 = vector.extract_strided_slice %139 {offsets = [50, 0], sizes = [1, 20], strides = [1, 1]} : vector<64x20xf32> to vector<1x20xf32>
    %220 = arith.truncf %219 : vector<1x20xf32> to vector<1x20xbf16>
    %c13 = arith.constant 13 : index
    %c0_164 = arith.constant 0 : index
    %c0_165 = arith.constant 0 : index
    %221 = vector.load %arg4[%c13, %c0_164, %c0_165] : memref<16x20x128xbf16, #tpu.memory_space<vmem>>, vector<1x20x128xbf16>
    %222 = vector.shape_cast %221 : vector<1x20x128xbf16> to vector<20x128xbf16>
    %cst_166 = arith.constant dense<0.000000e+00> : vector<1x128xf32>
    %223 = tpu.matmul %220, %222, %cst_166 {dimension_numbers = #tpu.dot_dimension_numbers<[1], [0], [0], [1], [0, 0, 1, 1], [], []>} : vector<1x20xbf16>, vector<20x128xbf16>, vector<1x128xf32> -> vector<1x128xf32>
    %224 = arith.addf %218, %223 : vector<1x128xf32>
    %225 = vector.extract_strided_slice %139 {offsets = [52, 0], sizes = [1, 20], strides = [1, 1]} : vector<64x20xf32> to vector<1x20xf32>
    %226 = arith.truncf %225 : vector<1x20xf32> to vector<1x20xbf16>
    %c14 = arith.constant 14 : index
    %c0_167 = arith.constant 0 : index
    %c0_168 = arith.constant 0 : index
    %227 = vector.load %arg4[%c14, %c0_167, %c0_168] : memref<16x20x128xbf16, #tpu.memory_space<vmem>>, vector<1x20x128xbf16>
    %228 = vector.shape_cast %227 : vector<1x20x128xbf16> to vector<20x128xbf16>
    %cst_169 = arith.constant dense<0.000000e+00> : vector<1x128xf32>
    %229 = tpu.matmul %226, %228, %cst_169 {dimension_numbers = #tpu.dot_dimension_numbers<[1], [0], [0], [1], [0, 0, 1, 1], [], []>} : vector<1x20xbf16>, vector<20x128xbf16>, vector<1x128xf32> -> vector<1x128xf32>
    %230 = arith.addf %224, %229 : vector<1x128xf32>
    %231 = vector.extract_strided_slice %139 {offsets = [54, 0], sizes = [1, 20], strides = [1, 1]} : vector<64x20xf32> to vector<1x20xf32>
    %232 = arith.truncf %231 : vector<1x20xf32> to vector<1x20xbf16>
    %c15 = arith.constant 15 : index
    %c0_170 = arith.constant 0 : index
    %c0_171 = arith.constant 0 : index
    %233 = vector.load %arg4[%c15, %c0_170, %c0_171] : memref<16x20x128xbf16, #tpu.memory_space<vmem>>, vector<1x20x128xbf16>
    %234 = vector.shape_cast %233 : vector<1x20x128xbf16> to vector<20x128xbf16>
    %cst_172 = arith.constant dense<0.000000e+00> : vector<1x128xf32>
    %235 = tpu.matmul %232, %234, %cst_172 {dimension_numbers = #tpu.dot_dimension_numbers<[1], [0], [0], [1], [0, 0, 1, 1], [], []>} : vector<1x20xbf16>, vector<20x128xbf16>, vector<1x128xf32> -> vector<1x128xf32>
    %236 = arith.addf %230, %235 : vector<1x128xf32>
    %cst_173 = arith.constant 0.000000e+00 : f32
    %237 = vector.broadcast %cst_173 : f32 to vector<1x128xf32>
    %238 = arith.maximumf %236, %237 : vector<1x128xf32>
    %c0_174 = arith.constant 0 : index
    %c0_175 = arith.constant 0 : index
    %c0_176 = arith.constant 0 : index
    %239 = vector.load %arg6[%c0_174, %c0_175, %c0_176] : memref<1x1x128xf32, #tpu.memory_space<vmem>>, vector<1x1x128xf32>
    %240 = vector.shape_cast %239 : vector<1x1x128xf32> to vector<1x128xf32>
    %241 = vector.shape_cast %238 : vector<1x128xf32> to vector<1x1x128xf32>
    tpu.vector_store %arg6[%c0_174, %c0_175, %c0_176], %241 {strides = array<i32>} : memref<1x1x128xf32, #tpu.memory_space<vmem>>, vector<1x1x128xf32>,
    return
  }
  func.func @transform_0(%arg0: i32) -> (i32, i32, i32, i32) {
    %c0_i32 = arith.constant 0 : i32
    %c0_i32_0 = arith.constant 0 : i32
    %c0_i32_1 = arith.constant 0 : i32
    %c0_i32_2 = arith.constant 0 : i32
    return %arg0, %c0_i32, %c0_i32_0, %c0_i32_1 : i32, i32, i32, i32
  }
  func.func @transform_1(%arg0: i32) -> (i32, i32, i32) {
    %c0_i32 = arith.constant 0 : i32
    %c0_i32_0 = arith.constant 0 : i32
    %c0_i32_1 = arith.constant 0 : i32
    %c0_i32_2 = arith.constant 0 : i32
    return %c0_i32, %c0_i32_0, %c0_i32_1 : i32, i32, i32
  }
  func.func @transform_2(%arg0: i32) -> (i32, i32, i32) {
    %c0_i32 = arith.constant 0 : i32
    %c0_i32_0 = arith.constant 0 : i32
    %c0_i32_1 = arith.constant 0 : i32
    %c0_i32_2 = arith.constant 0 : i32
    return %c0_i32, %c0_i32_0, %c0_i32_1 : i32, i32, i32
  }
  func.func @transform_3(%arg0: i32) -> (i32, i32, i32) {
    %c0_i32 = arith.constant 0 : i32
    %c0_i32_0 = arith.constant 0 : i32
    %c0_i32_1 = arith.constant 0 : i32
    %c0_i32_2 = arith.constant 0 : i32
    return %c0_i32, %c0_i32_0, %c0_i32_1 : i32, i32, i32
  }
  func.func @transform_4(%arg0: i32) -> (i32, i32) {
    %c0_i32 = arith.constant 0 : i32
    %c0_i32_0 = arith.constant 0 : i32
    %c0_i32_1 = arith.constant 0 : i32
    return %c0_i32, %c0_i32_0 : i32, i32
  }
  func.func @transform_5(%arg0: i32) -> (i32, i32, i32) {
    %c0_i32 = arith.constant 0 : i32
    %c0_i32_0 = arith.constant 0 : i32
    %c0_i32_1 = arith.constant 0 : i32
    return %arg0, %c0_i32, %c0_i32_0 : i32, i32, i32
  }
}

</mosaic_0001>

<bundles_post_ra>
// kernel: offset_regr_forward.1
= control target key start
LH: loop header
LB: loop body
LE: loop exit
PB: predicated region body
PF: predicated region fallthrough
CT: control target
= control target key end

     0   :  { %10 = vsyncpa [#allocation4], 0  ;;  %s6419_s0 = inlined_call_operand.vmem [shape: f32[8,9,9,8], index: 0, kind: input, shape index: {}]   ;;  %s6420_s1 = inlined_call_operand.vmem [shape: bf16[9,8,100], index: 1, kind: input, shape index: {}]   ;;  %s6421_s2 = inlined_call_operand.vmem [shape: bf16[9,100,20], index: 2, kind: input, shape index: {}]   ;;  %s6422_s3 = inlined_call_operand.vmem [shape: bf16[16,20,128], index: 3, kind: input, shape index: {}]   ;;  %s6423_s4 = inlined_call_operand.vmem [shape: f32[1,128], index: 4, kind: input, shape index: {}]   ;;  %s6424_s5 = inlined_call_operand.hbm [shape: f32[2,1,128], index: 5, kind: output, shape index: {}]  }
   0x1   :  { %12 = vsyncpa [#allocation4 + $0x1], 0  ;;  %s5165_s18 = smov 0   ;;  %s5167_s19 = smov 0  }
   0x2   :  { %s5169_s20 = smov 0   ;;  %s5171_s21 = smov 0  }
   0x3 LB: > { %s5186_s22 = sadd.s32 4294967295, %s5130_s21   ;;  %s3715_s23 = sadd.s32 4294967294, %s5130_s21   ;;  %s5130_s21 = sphi %s5171_s21, %s6540_s21   ;;  %s5126_s20 = sphi %s5169_s20, %s6539_s20   ;;  %s5122_s19 = sphi %s5167_s19, %s6538_s19   ;;  %s5118_s18 = sphi %s5165_s18, %s6537_s18  }
   0x4   : > { %s5190_s24 = sadd.s32 1, %s5130_s21   ;;  %s135_s25 = sadd.s32 1, %s5126_s20 }
   0x5   : > { %s132_s26 = ssub.s32 %s5130_s21, %s5190_s24  ;;  %p145_p0 = scmp.ne.s32.totalorder %s5126_s20, %s5122_s19 }
   0x6   : > { %p133_p1 = scmp.eq.s32.totalorder %s132_s26, 0  ;;  %p146_p2 = scmp.eq.s32.totalorder %s5186_s22, 1 }
   0x7   : > { %p151_p3 = scmp.ne.s32.totalorder %s5122_s19, %s5118_s18  ;;  %p152_p4 = scmp.eq.s32.totalorder %s3715_s23, 1 }
   0x8   : > { %s5201_s27 = scalar_select %p133_p1, %s5126_s20, %s135_s25  }
   0x9   : > { %p5203_p5 = por %p146_p2, %p145_p0  ;;  %p5207_p6 = por %p152_p4, %p151_p3 }
   0xa   : > { %p3718_p7 = scmp.ge.s32.totalorder %s5130_s21, 1  ;;  %p192_p8 = scmp.lt.s32.totalorder %s5130_s21, 3 }
   0xc   : > { %p193_p9 = pnand %p3718_p7, %p192_p8 }
   0xe   : > { %196 = sbr.rel (%p193_p9) target bundleno = 1221 (0x4c5), region = 40 }
  0x15   : > { %v303_v0 = vld [vmem:[%s6420_s1] sm:$0xf]  ;;  %vm372_vm0 = vcmask 1043456   ;;  %s3719_s7 = sshll.u32 %s5186_s22, 2  ;;  %v3782_v2 = vld [vmem:[%s6420_s1 + $0x8] sm:$0xf] }
  0x16   : > { %4914 = vmatprep.subr.msk.bf16.mxu0 %vm372_vm0, %v303_v0  ;;  %v454_v1 = vsel %vm372_vm0, %v303_v0, 0  ;;  %p221_p10 = scmp.lt.s32.totalorder %s3719_s7, 7  ;;  %v3787_v3 = vld [vmem:[%s6420_s1 + $0xc] sm:$0xf]  ;;  %v5229_v4 = vld [vmem:[%s6420_s1 + $0x10] sm:$0xf] }
  0x17   : > { %4319 = vmatpush3.bf16.msra.mxu0 %v454_v1  ;;  %v3773_v5 = vld [vmem:[%s6420_s1 + $0x4] sm:$0xf]  ;;  %v5237_v6 = vld [vmem:[%s6421_s2 + $0x34] sm:$0xff]   ;;  %vm320_vm1 = vcmask 1046528   ;;  %vm359_vm2 = vcmask 64512   ;;  %v588_v11 = vsel %vm372_vm0, %v3782_v2, 0 }
  0x18   : > { %s6542_s7 = smov (!%p221_p10, %s3719_s7), 7  ;;  %4915 = vmatprep.subr.msk.bf16.mxu0 %vm372_vm0, %v3782_v2  ;;  %4913 = vmatprep.subr.msk.bf16.mxu1 %vm372_vm0, %v3773_v5  ;;  %v374_v7 = vsel %vm372_vm0, %v3773_v5, 0  ;;  %v5255_v12 = vld [vmem:[%s6420_s1 + $0x14] sm:$0xf]  ;;  %v5263_v15 = vsel %vm372_vm0, %v3787_v3, 0  ;;  %v5286_v23 = vsel %vm372_vm0, %v5229_v4, 0 }
  0x19   : > { %s4931_s12 = smul.u32 144, %s6542_s7  ;;  %4309 = vmatpush3.bf16.msra.mxu1 %v374_v7  ;;  %v5268_v16 = vld [vmem:[%s6420_s1 + $0x18] sm:$0xf]  ;;  %v5273_v17 = vld [vmem:[%s6420_s1 + $0x1c] sm:$0xf]  ;;  %v5307_v36 = vsel %vm372_vm0, %v5255_v12, 0 }
  0x1a   : > { %4398 = vmatprep.subr.bf16.mxu1 %v5237_v6  ;;  %6451 = vst [vmem:[#allocation8_spill] sm:$0xff] %v5268_v16  ;;  %6452 = vst [vmem:[#allocation9_spill] sm:$0xff] %v5273_v17  ;;  %v5311_v37 = vsel %vm372_vm0, %v5268_v16, 0  ;;  %v5315_v38 = vsel %vm372_vm0, %v5273_v17, 0  ;;  %vm1335_vm3 = vcmask 818176   ;;  %vm1337_vm4 = vcmask 812032  }
  0x1b   : > { %s5244_s30 = scalar_lea.vmem %s6419_s0, %s4931_s12  ;;  %6456 = vst [vmem:[#allocation13_spill] sm:$0xff] %v5311_v37  ;;  %6457 = vst [vmem:[#allocation14_spill] sm:$0xff] %v5315_v38  ;;  %vm1468_vm5 = vcmask 1041408   ;;  %vm5133_vm6 = vmmov 0   ;;  %vm2678_vm7 = vcmask 162816   ;;  %s218_s10 = sand.u32 1, %s5122_s19  }
  0x1c   : > { %v3755_v8 = vld [vmem:[%s5244_s30 + $0x1b0] sm:$0xff]  ;;  %v3756_v9 = vld [vmem:[%s5244_s30 + $0x1b8] sm:$0x1]  ;;  %v5249_v10 = vld [vmem:[%s5244_s30 + $0x1c0] sm:$0xff]  ;;  %s4113_s13 = sshll.u32 %s5186_s22, 4  ;;  %s219_s14 = scalar_lea.vmem [#allocation3], %s218_s10 }
  0x1d   : > { %6449 = vst [vmem:[#allocation6_spill] sm:$0xff] %v5249_v10  ;;  %v5259_v13 = vld [vmem:[%s5244_s30 + $0x1d0] sm:$0xff]  ;;  %v299_v14 = vpack.c.bf16 %v5249_v10, %v3755_v8  ;;  %v537_v18 = vrot.slane %v3755_v8, 1  ;;  %v5278_v20 = vld [vmem:[%s5244_s30 + $0x1e0] sm:$0xff]  ;;  %v3762_v21 = vld [vmem:[%s5244_s30 + $0x1e8] sm:$0x1]  ;;  %s6377_s23 = scalar_lea.hbm %s6424_s5, %s4113_s13 }
  0x1e   : > { %6450 = vst [vmem:[#allocation7_spill] sm:$0xff] %v5259_v13  ;;  %6453 = vst [vmem:[#allocation10_spill] sm:$0xff] %v5278_v20  ;;  %v5282_v22 = vld [vmem:[%s5244_s30 + $0x1f0] sm:$0xff]  ;;  %v3760_v24 = vld [vmem:[%s5244_s30 + $0x1d8] sm:$0x1]  ;;  %v538_v25 = vrot.slane %v3756_v9, 1  ;;  %v300_v27 = vpack.c.bf16 %v5278_v20, %v5259_v13 }
  0x1f   : > { %6454 = vst [vmem:[#allocation11_spill] sm:$0xff] %v5282_v22  ;;  %4320 = vmatprep.mubr.msk.bf16.mxu0 %vm359_vm2, %v299_v14  ;;  %v540_v26 = vrot.slane %v5249_v10, 1  ;;  %v546_v28 = vrot.slane %v5278_v20, 1  ;;  %v5295_v29 = vld [vmem:[%s5244_s30 + $0x200] sm:$0xff]  ;;  %v547_v30 = vrot.slane %v3762_v21, 1  ;;  %v549_v32 = vrot.slane %v5282_v22, 1 }
  0x20   : > { %6455 = vst [vmem:[#allocation12_spill] sm:$0xff] %v5295_v29  ;;  %v301_v31 = vpack.c.bf16 %v5295_v29, %v5282_v22  ;;  %v3758_v33 = vld [vmem:[%s5244_s30 + $0x1c8] sm:$0x1]  ;;  %v3764_v34 = vld [vmem:[%s5244_s30 + $0x1f8] sm:$0x1]  ;;  %4321 = vmatmul.mubr.msk.bf16.vlgmr.msra.gmra.mrb[0].mxu0 %vm359_vm2, %v300_v27  ;;  %v543_v39 = vrot.slane %v5259_v13, 1  ;;  %v539_v45 = vsel %vm320_vm1, %v537_v18, %v538_v25 }
  0x21   : > { %v544_v40 = vrot.slane %v3760_v24, 1  ;;  %4329 = vmatpush3.bf16.msra.mxu0 %v588_v11  ;;  %v5320_v41 = vld [vmem:[%s5244_s30 + $0x210] sm:$0xff]  ;;  %v5323_v42 = vld [vmem:[%s5244_s30 + $0x220] sm:$0xff]  ;;  %v541_v43 = vrot.slane %v3758_v33, 1  ;;  %v550_v44 = vrot.slane %v3764_v34, 1  ;;  %v5335_v49 = vsel %vm320_vm1, %v546_v28, %v547_v30  ;;  %s3660_s15 = sshll.u32 %s219_s14, 4  ;;  %s6379_s15 = int_to_ptr.vmem [resolvable:$true] %s3660_s15 }
  0x22   : > { %4324 = vmatprep.mubr.msk.bf16.mxu0 %vm359_vm2, %v301_v31  ;;  %6458 = vst [vmem:[#allocation15_spill] sm:$0xff] %v5320_v41  ;;  %6459 = vst [vmem:[#allocation16_spill] sm:$0xff] %v5323_v42  ;;  %4916 = vmatprep.subr.msk.bf16.mxu0 %vm372_vm0, %v3787_v3  ;;  %v3766_v46 = vld [vmem:[%s5244_s30 + $0x208] sm:$0x1]  ;;  %v5329_v47 = vld [vmem:[%s5244_s30 + $0x218] sm:$0x1]  ;;  %v302_v53 = vpack.c.bf16 %v5323_v42, %v5320_v41 }
  0x23   : > { %v5332_v48 = vld [vmem:[%s5244_s30 + $0x228] sm:$0x1]  ;;  %6460 = vst [vmem:[#allocation17_spill] sm:$0xff] %v5335_v49  ;;  %v552_v50 = vrot.slane %v5295_v29, 1  ;;  %v5339_v51 = vsel %vm320_vm1, %v540_v26, %v541_v43  ;;  %v5342_v52 = vsel %vm320_vm1, %v549_v32, %v550_v44  ;;  %v5351_v57 = vld [vmem:[%s5244_s30 + $0xa0] sm:$0xff]  ;;  %v5354_v58 = vld [vmem:[%s5244_s30 + $0xb0] sm:$0xff]  ;;  %v5399_v26 = vsel %vm320_vm1, %v543_v39, %v544_v40 }
  0x24   : > { %6461 = vst [vmem:[#allocation18_spill] sm:$0xff] %v5342_v52  ;;  %6462 = vst [vmem:[#allocation19_spill] sm:$0xff] %v5351_v57  ;;  %v569_v59 = vpack.c.bf16 %v5339_v51, %v539_v45  ;;  %v553_v60 = vrot.slane %v3766_v46, 1  ;;  %v556_v61 = vrot.slane %v5329_v47, 1  ;;  %v5360_v63 = vld [vmem:[%s5244_s30 + $0xc0] sm:$0xff]  ;;  %v5363_v0 = vld [vmem:[%s5244_s30 + $0xd0] sm:$0xff]  ;;  %v570_v39 = vpack.c.bf16 %v5335_v49, %v5399_v26 }
  0x25   : > { %6463 = vst [vmem:[#allocation20_spill] sm:$0xff] %v5354_v58  ;;  %v5366_v1 = vld [vmem:[%s5244_s30 + $0xe0] sm:$0xff]  ;;  %v5371_v5 = vld [vmem:[%s5244_s30 + $0xf0] sm:$0xff]  ;;  %v5383_v11 = vld [vmem:[%s5244_s30 + $0x18] sm:$0x1]  ;;  %v6472_v35 = vrot.slane %v5320_v41, 1 }
  0x26   : > { %v5374_v7 = vld [vmem:[%s5244_s30 + $0x100] sm:$0xff]  ;;  %v5377_v8 = vld [vmem:[%s5244_s30 + $0x110] sm:$0xff]  ;;  %v5390_v21 = vld [vmem:[%s5244_s30 + $0x28] sm:$0x1]  ;;  %v5415_v33 = vsel %vm320_vm1, %v552_v50, %v553_v60  ;;  %v6473_v62 = vrot.slane %v5332_v48, 1  ;;  %v6474_v34 = vrot.slane %v5323_v42, 1 }
  0x27   : > { %v5380_v9 = vld [vmem:[%s5244_s30 + $0x10] sm:$0xff]  ;;  %v5386_v14 = vld [vmem:[%s5244_s30 + $0x20] sm:$0xff]  ;;  %v5396_v25 = vld [vmem:[%s5244_s30 + $0x38] sm:$0x1]  ;;  %v571_v3 = vpack.c.bf16 %v5415_v33, %v5342_v52  ;;  %s3648_s25 = scalar_lea.sflag [#allocation4], %s218_s10  ;;  %s5068_s22 = scalar_lea.vmem %s6379_s15, 16 }
  0x28   : > { %v5393_v24 = vld [vmem:[%s5244_s30 + $0x30] sm:$0xff]  ;;  %4325 = vmatmul.mubr.msk.bf16.gmra.mrb[4].mxu0 %vm359_vm2, %v302_v53  ;;  %v5405_v30 = vld [vmem:[%s5244_s30 + $0x40] sm:$0xff]  ;;  %v5408_v31 = vld [vmem:[%s5244_s30 + $0x48] sm:$0x1]  ;;  %v5502_v46 = vsel %vm320_vm1, %v6474_v34, %v6473_v62  ;;  %p5069_p11 = scmp.ne.s32.totalorder %s6379_s15, %s5068_s22  ;;  %s5134_s26 = smov [#allocation3]  }
  0x29   : > { %v5411_v32 = vld [vmem:[%s5244_s30 + $0x50] sm:$0xff]  ;;  %4330 = vmatprep.mubr.msk.bf16.mxu0 %vm359_vm2, %v569_v59  ;;  %v5421_v43 = vld [vmem:[%s5244_s30 + $0x58] sm:$0x1]  ;;  %v5424_v44 = vld [vmem:[%s5244_s30 + $0x60] sm:$0xff] }
  0x2a   : > { %v5431_v59 = vld [vmem:[%s5244_s30 + $0x68] sm:$0x1]  ;;  %v5438_v40 = vld [vmem:[%s5244_s30 + $0x70] sm:$0xff]  ;;  %v5444_v28 = vld [vmem:[%s5244_s30 + $0x78] sm:$0x1]  ;;  %p5070_p12 = pnand %p5069_p11, %p5203_p5 }
  0x2b   : > { %v5447_v27 = vld [vmem:[%s5244_s30 + $0x80] sm:$0xff]  ;;  %v5450_v18 = vld [vmem:[%s5244_s30 + $0x88] sm:$0x1]  ;;  %v5460_v60 = vld [vmem:[%s5244_s30 + $0xb8] sm:$0x1] }
  0x2c   : > { %v5457_v19 = vld [vmem:[%s5244_s30 + $0xa8] sm:$0x1]  ;;  %6465 = vst [vmem:[#allocation22_spill] sm:$0xff] %v5460_v60  ;;  %v5467_v50 = vld [vmem:[%s5244_s30 + $0xd8] sm:$0x1]  ;;  %v5470_v53 = vld [vmem:[%s5244_s30 + $0x230] sm:$0xff]  ;;  %p5071_p13 = pneg %p5070_p12 }
  0x2d   : > { %6464 = vst [vmem:[#allocation21_spill] sm:$0xff] %v5457_v19  ;;  %v5464_v56 = vld [vmem:[%s5244_s30 + $0xc8] sm:$0x1]  ;;  %6467 = vst [vmem:[#allocation24_spill] sm:$0xff] %v5467_v50  ;;  %v5483_v54 = vld [vmem:[%s5244_s30 + $0xf8] sm:$0x1] }
  0x2e   : > { %6466 = vst [vmem:[#allocation23_spill] sm:$0xff] %v5464_v56  ;;  %6468 = vst [vmem:[#allocation25_spill] sm:$0xff] %v5470_v53  ;;  %v5477_v55 = vld [vmem:[%s5244_s30 + $0xe8] sm:$0x1]  ;;  %v3739_v47 = vld [vmem:[%s5244_s30 + $0x130] sm:$0xff]  ;;  %v1237_v42 = vrot.slane %v5470_v53, 1 }
  0x2f   : > { %6469 = vst [vmem:[#allocation26_spill] sm:$0xff] %v5477_v55  ;;  %6470 = vst [vmem:[#allocation27_spill] sm:$0xff] %v5483_v54  ;;  %v5486_v45 = vld [vmem:[%s5244_s30 + $0x108] sm:$0x1]  ;;  %v3740_v2 = vld [vmem:[%s5244_s30 + $0x138] sm:$0x1] }
  0x30   : > { %4331 = vmatmul.mubr.msk.bf16.vlgmr.msra.gmra.mrb[0].mxu0 %vm359_vm2, %v570_v39  ;;  %6471 = vst [vmem:[#allocation28_spill] sm:$0xff] %v5486_v45  ;;  %v5495_v39 = vsel %vm320_vm1, %v6472_v35, %v556_v61  ;;  %v3741_v34 = vld [vmem:[%s5244_s30 + $0x140] sm:$0xff]  ;;  %v3743_v49 = vld [vmem:[%s5244_s30 + $0x150] sm:$0xff]  ;;  %v3744_v35 = vld [vmem:[%s5244_s30 + $0x158] sm:$0x1]  ;;  %v324_v52 = vrot.slane %v3739_v47, 1 }
  0x31   : > { %4339 = vmatpush3.bf16.msra.mxu0 %v5263_v15  ;;  %4334 = vmatprep.mubr.msk.bf16.mxu0 %vm359_vm2, %v571_v3  ;;  %v5506_v3 = vld [vmem:[%s5244_s30 + $0x118] sm:$0x1]  ;;  %v3742_v15 = vld [vmem:[%s5244_s30 + $0x148] sm:$0x1]  ;;  %v3745_v38 = vld [vmem:[%s5244_s30 + $0x160] sm:$0xff]  ;;  %v572_v61 = vpack.c.bf16 %v5502_v46, %v5495_v39  ;;  %v325_v20 = vrot.slane %v3740_v2, 1 }
  0x32   : > { %6475 = vst [vmem:[#allocation29_spill] sm:$0xff] %v5506_v3  ;;  %4917 = vmatprep.subr.msk.bf16.mxu0 %vm372_vm0, %v5229_v4  ;;  %v3747_v48 = vld [vmem:[%s5244_s30 + $0x170] sm:$0xff]  ;;  %v3746_v29 = vld [vmem:[%s5244_s30 + $0x168] sm:$0x1]  ;;  %v3748_v41 = vld [vmem:[%s5244_s30 + $0x178] sm:$0x1]  ;;  %v663_v4 = vpack.c.bf16 %v5354_v58, %v5351_v57  ;;  %v664_v58 = vpack.c.bf16 %v5363_v0, %v5360_v63 }
  0x33   : > { %v3749_v22 = vld [vmem:[%s5244_s30 + $0x180] sm:$0xff]  ;;  %v3750_v10 = vld [vmem:[%s5244_s30 + $0x188] sm:$0x1]  ;;  %v327_v17 = vrot.slane %v3741_v34, 1  ;;  %v328_v45 = vrot.slane %v3742_v15, 1  ;;  %v330_v37 = vrot.slane %v3743_v49, 1 }
  0x34   : > { %v3753_v13 = vld [vmem:[%s5244_s30 + $0x1a0] sm:$0xff]  ;;  %v3751_v54 = vld [vmem:[%s5244_s30 + $0x190] sm:$0xff]  ;;  %v3754_v62 = vld [vmem:[%s5244_s30 + $0x1a8] sm:$0x1]  ;;  %v331_v53 = vrot.slane %v3744_v35, 1  ;;  %v333_v55 = vrot.slane %v3745_v38, 1  ;;  %v665_v38 = vpack.c.bf16 %v5371_v5, %v5366_v1  ;;  %v5550_v35 = vsel %vm320_vm1, %v324_v52, %v325_v20 }
  0x35   : > { %v3737_v3 = vld [vmem:[%s5244_s30 + $0x120] sm:$0xff]  ;;  %v3738_v50 = vld [vmem:[%s5244_s30 + $0x128] sm:$0x1]  ;;  %v334_v56 = vrot.slane %v3746_v29, 1  ;;  %v336_v16 = vrot.slane %v3747_v48, 1  ;;  %v337_v34 = vrot.slane %v3748_v41, 1 }
  0x36   : > { %v3752_v47 = vld [vmem:[%s5244_s30 + $0x198] sm:$0x1]  ;;  %v339_v15 = vrot.slane %v3749_v22, 1  ;;  %v340_v49 = vrot.slane %v3750_v10, 1  ;;  %v1137_v60 = vrot.slane %v3753_v13, 1  ;;  %v1138_v57 = vrot.slane %v3754_v62, 1 }
  0x37   : > { %v3772_v2 = vld [vmem:[%s5244_s30 + $0x238] sm:$0x1]  ;;  %v321_v19 = vrot.slane %v3737_v3, 1  ;;  %v342_v29 = vrot.slane %v3751_v54, 1  ;;  %v322_v48 = vrot.slane %v3738_v50, 1  ;;  %v1241_v10 = vpack.c.bf16 %v5399_v26, %v5339_v51  ;;  %s5072_s30 = sshll.u32 %s5134_s26, 4  ;;  %s5073_s30 = int_to_ptr.vmem [resolvable:$false] %s5072_s30 }
  0x38   : > { %4335 = vmatmul.mubr.msk.bf16.gmra.mrb[4].mxu0 %vm359_vm2, %v572_v61  ;;  %v5553_v61 = vsel %vm320_vm1, %v327_v17, %v328_v45  ;;  %v1243_v13 = vpack.c.bf16 %v5495_v39, %v5415_v33  ;;  %v5563_v22 = vsel %vm320_vm1, %v330_v37, %v331_v53  ;;  %v343_v41 = vrot.slane %v3752_v47, 1  ;;  %v4974_v37 = vld [vmem:[%s6421_s2 + $0x3c] sm:$0xff]   ;;  %v4977_v51 = vld [vmem:[%s6421_s2 + $0x54] sm:$0xff]   ;;  %s5074_s6 = scalar_lea.vmem %s5073_s30, 32  ;;  %p5075_p0 = scmp.lt.s32.totalorder %s6379_s15, %s5073_s30 }
  0x39   : > { %4340 = vmatprep.mubr.msk.bf16.mxu0 %vm359_vm2, %v663_v4  ;;  %v5556_v4 = vsel %vm320_vm1, %v1137_v60, %v1138_v57  ;;  %v323_v20 = vsel %vm320_vm1, %v321_v19, %v322_v48  ;;  %v1238_v52 = vrot.slane %v3772_v2, 1  ;;  %v5567_v54 = vsel %vm320_vm1, %v333_v55, %v334_v56  ;;  %v4978_v33 = vld [vmem:[%s6421_s2 + $0x5c] sm:$0xff]   ;;  %p5076_p1 = scmp.lt.s32.totalorder %s5074_s6, %s5068_s22 }
  0x3a   : > { %v5570_v17 = vsel %vm320_vm1, %v336_v16, %v337_v34  ;;  %v353_v57 = vpack.c.bf16 %v5550_v35, %v323_v20  ;;  %v354_v45 = vpack.c.bf16 %v5563_v22, %v5553_v61  ;;  %v6476_v55 = vrot.slane %v5383_v11, 1  ;;  %v6492_v20 = vld [vmem:[#allocation21_spill] sm:$0xff] }
  0x3b   : > { %v355_v50 = vpack.c.bf16 %v5570_v17, %v5567_v54  ;;  %v5581_v19 = vsel %vm320_vm1, %v1237_v42, %v1238_v52  ;;  %v6477_v56 = vrot.slane %v5380_v9, 1  ;;  %v6478_v42 = vrot.slane %v5390_v21, 1  ;;  %p5077_p2 = por %p5076_p1, %p5075_p0 }
  0x3c   : > { %4310 = vmatprep.mubr.msk.bf16.mxu1 %vm359_vm2, %v353_v57  ;;  %v1244_v16 = vpack.c.bf16 %v5581_v19, %v5502_v46  ;;  %v6479_v60 = vrot.slane %v5386_v14, 1  ;;  %v666_v9 = vpack.c.bf16 %v5377_v8, %v5374_v7  ;;  %v341_v14 = vsel %vm320_vm1, %v339_v15, %v340_v49  ;;  %v6494_v57 = vld [vmem:[#allocation19_spill] sm:$0xff]  ;;  %v4979_v46 = vld [vmem:[%s6421_s2 + $0x64] ss:$0 sps:$4 sm:$0x33]  }
  0x3d   : > { %v775_v53 = vsel %vm320_vm1, %v6477_v56, %v6476_v55  ;;  %4311 = vmatmul.mubr.msk.bf16.vlgmr.msra.gmra.mrb[0].mxu1 %vm359_vm2, %v354_v45  ;;  %v344_v21 = vsel %vm320_vm1, %v342_v29, %v343_v41  ;;  %v6480_v3 = vrot.slane %v5396_v25, 1  ;;  %v6482_v47 = vrot.slane %v5408_v31, 1  ;;  %v6498_v55 = vld [vmem:[#allocation20_spill] sm:$0xff]  ;;  %p5078_p3 = pnand %p5077_p2, %p5071_p13 }
  0x3e   : > { %4314 = vmatprep.mubr.msk.bf16.mxu1 %vm359_vm2, %v355_v50  ;;  %4399 = vmatpush3.bf16.msra.mxu1 %v5237_v6  ;;  %v6481_v6 = vrot.slane %v5393_v24, 1  ;;  %v6483_v2 = vrot.slane %v5405_v30, 1  ;;  %v6484_v15 = vrot.slane %v5421_v43, 1  ;;  %v6485_v49 = vrot.slane %v5411_v32, 1  ;;  %v6500_v56 = vld [vmem:[#allocation8_spill] sm:$0xff] }
  0x3f   : > { %4400 = vmatprep.subr.bf16.mxu1 %v4974_v37  ;;  %v6486_v29 = vrot.slane %v5431_v59, 1  ;;  %v6487_v25 = vrot.slane %v5424_v44, 1  ;;  %v6488_v30 = vrot.slane %v5444_v28, 1  ;;  %v6489_v32 = vrot.slane %v5438_v40, 1 }
  0x40   : > { %4341 = vmatmul.mubr.msk.bf16.vlgmr.msra.gmra.mrb[0].mxu0 %vm359_vm2, %v664_v58  ;;  %v778_v58 = vsel %vm320_vm1, %v6479_v60, %v6478_v42  ;;  %v781_v62 = vsel %vm320_vm1, %v6481_v6, %v6480_v3  ;;  %v784_v34 = vsel %vm320_vm1, %v6483_v2, %v6482_v47  ;;  %v6490_v44 = vrot.slane %v5450_v18, 1  ;;  %v6507_v3 = vld [vmem:[#allocation26_spill] sm:$0xff]  ;;  %v6510_v2 = vld [vmem:[#allocation27_spill] sm:$0xff] }
  0x41   : > { %4349 = vmatpush3.bf16.msra.mxu0 %v5286_v23  ;;  %4344 = vmatprep.mubr.msk.bf16.mxu0 %vm359_vm2, %v665_v38  ;;  %v4975_v23 = vld [vmem:[%s6421_s2 + $0x44] sm:$0xff]   ;;  %v805_v11 = vpack.c.bf16 %v778_v58, %v775_v53  ;;  %v787_v38 = vsel %vm320_vm1, %v6485_v49, %v6484_v15  ;;  %v790_v24 = vsel %vm320_vm1, %v6487_v25, %v6486_v29  ;;  %v6491_v59 = vrot.slane %v5447_v27, 1  ;;  %v6513_v29 = vld [vmem:[#allocation13_spill] sm:$0xff] }
  0x42   : > { %4918 = vmatprep.subr.msk.bf16.mxu0 %vm372_vm0, %v5255_v12  ;;  %v356_v12 = vpack.c.bf16 %v344_v21, %v341_v14  ;;  %4401 = vmatpush3.bf16.msra.mxu1 %v4974_v37  ;;  %v806_v31 = vpack.c.bf16 %v784_v34, %v781_v62  ;;  %v807_v48 = vpack.c.bf16 %v790_v24, %v787_v38  ;;  %v6493_v52 = vrot.slane %v6492_v20, 1  ;;  %v6496_v37 = vld [vmem:[#allocation22_spill] sm:$0xff]  ;;  %v6501_v27 = vld [vmem:[#allocation23_spill] sm:$0xff] }
  0x43   : > { %4402 = vmatprep.subr.bf16.mxu1 %v4975_v23  ;;  %v793_v43 = vsel %vm320_vm1, %v6489_v32, %v6488_v30  ;;  %v796_v41 = vsel %vm320_vm1, %v6491_v59, %v6490_v44  ;;  %v6495_v45 = vrot.slane %v6494_v57, 1  ;;  %v6497_v50 = vrot.slane %v6496_v37, 1  ;;  %v6520_v32 = vld [vmem:[#allocation9_spill] sm:$0xff]  ;;  %v6521_v44 = vld [vmem:[#allocation7_spill] sm:$0xff]  ;;  %v6522_v59 = vld [vmem:[#allocation6_spill] sm:$0xff] }
  0x44   : > { %v6499_v28 = vrot.slane %v6498_v55, 1  ;;  %v808_v18 = vpack.c.bf16 %v796_v41, %v793_v43  ;;  %v6502_v42 = vrot.slane %v6501_v27, 1  ;;  %v6503_v60 = vrot.slane %v5360_v63, 1  ;;  %v6524_v20 = vld [vmem:[#allocation11_spill] sm:$0xff]  ;;  %v6527_v57 = vld [vmem:[#allocation14_spill] sm:$0xff]  ;;  %v6531_v55 = vld [vmem:[#allocation25_spill] sm:$0xff] }
  0x45   : > { %4315 = vmatmul.mubr.msk.bf16.gmra.mrb[4].mxu1 %vm359_vm2, %v356_v12  ;;  %v6508_v6 = vrot.slane %v6507_v3, 1  ;;  %v6509_v62 = vrot.slane %v5366_v1, 1  ;;  %v6511_v34 = vrot.slane %v6510_v2, 1  ;;  %v6512_v15 = vrot.slane %v5371_v5, 1 }
  0x46   : > { %4403 = vmatpush3.bf16.msra.mxu1 %v4975_v23  ;;  %v920_v40 = vsel %vm320_vm1, %v6499_v28, %v6497_v50  ;;  %v923_v58 = vsel %vm320_vm1, %v6503_v60, %v6502_v42  ;;  %v6504_v23 = vld [vmem:[#allocation24_spill] sm:$0xff]  ;;  %v6516_v1 = vrot.slane %v5374_v7, 1  ;;  %v6519_v5 = vrot.slane %v5377_v8, 1  ;;  %v3812_v7 = vld [vmem:[%s6420_s1 + $0x20] sm:$0xf] }
  0x47   : > { %v929_v47 = vsel %vm320_vm1, %v6509_v62, %v6508_v6  ;;  %v932_v63 = vsel %vm320_vm1, %v6512_v15, %v6511_v34  ;;  %v6523_v41 = vpack.c.bf16 %v6521_v44, %v6522_v59  ;;  %v1141_v50 = vpack.c.bf16 %v5553_v61, %v5550_v35  ;;  %v6532_v28 = vld [vmem:[#allocation16_spill] sm:$0xff]  ;;  %v6534_v61 = vld [vmem:[#allocation18_spill] sm:$0xff] }
  0x48   : > { %4345 = vmatmul.mubr.msk.bf16.gmra.mrb[4].mxu0 %vm359_vm2, %v666_v9  ;;  %v6505_v9 = vrot.slane %v6504_v23, 1  ;;  %v949_v38 = vpack.c.bf16 %v932_v63, %v929_v47  ;;  %v1144_v35 = vpack.c.bf16 %v5556_v4, %v344_v21  ;;  %v4976_v4 = vld [vmem:[%s6421_s2 + $0x4c] sm:$0xff]   ;;  %v5132_v26 = vmov 0.0  }
  0x49   : > { %4350 = vmatprep.mubr.msk.bf16.mxu0 %vm359_vm2, %v805_v11  ;;  %v6506_v11 = vrot.slane %v5363_v0, 1  ;;  %v6514_v0 = vld [vmem:[#allocation28_spill] sm:$0xff]  ;;  %4404 = vmatprep.subr.bf16.mxu1 %v4976_v4  ;;  %1343 = vst.msk [vmem:[#allocation2 + $0x30] sm:$0xff] %vm1335_vm3, %v5132_v26  ;;  %1336 = vst.msk [vmem:[#allocation2] sm:$0xff] %vm1335_vm3, %v5132_v26  ;;  %v1470_v39 = vsel %vm1468_vm5, %v4979_v46, 0  ;;  %v4981_v59 = vld [vmem:[%s6421_s2 + $0x8] sm:$0xff]  }
  0x4a   : > { %v6515_v25 = vrot.slane %v6514_v0, 1  ;;  %4405 = vmatpush3.bf16.msra.mxu1 %v4976_v4  ;;  %1344 = vst.msk [vmem:[#allocation2 + $0x38] sm:$0x3] %vm1337_vm4, %v5132_v26  ;;  %1338 = vst.msk [vmem:[#allocation2 + $0x8] sm:$0x3] %vm1337_vm4, %v5132_v26 }
  0x4b   : > { %v926_v12 = vsel %vm320_vm1, %v6506_v11, %v6505_v9  ;;  %1339 = vst.msk [vmem:[#allocation2 + $0x10] sm:$0xff] %vm1335_vm3, %v5132_v26  ;;  %1341 = vst.msk [vmem:[#allocation2 + $0x20] sm:$0xff] %vm1335_vm3, %v5132_v26  ;;  %4406 = vmatprep.subr.bf16.mxu1 %v4977_v51 }
  0x4c   : > { %v948_v49 = vpack.c.bf16 %v926_v12, %v923_v58  ;;  %v935_v24 = vsel %vm320_vm1, %v6516_v1, %v6515_v25  ;;  %1340 = vst.msk [vmem:[#allocation2 + $0x18] sm:$0x3] %vm1337_vm4, %v5132_v26  ;;  %1342 = vst.msk [vmem:[#allocation2 + $0x28] sm:$0x3] %vm1337_vm4, %v5132_v26 }
  0x4d   : > { %1345 = vst.msk [vmem:[#allocation2 + $0x40] sm:$0xff] %vm1335_vm3, %v5132_v26  ;;  %1347 = vst.msk [vmem:[#allocation2 + $0x50] sm:$0xff] %vm1335_vm3, %v5132_v26 }
  0x4e   : > { %1346 = vst.msk [vmem:[#allocation2 + $0x48] sm:$0x3] %vm1337_vm4, %v5132_v26  ;;  %1348 = vst.msk [vmem:[#allocation2 + $0x58] sm:$0x3] %vm1337_vm4, %v5132_v26  ;;  %4407 = vmatpush3.bf16.msra.mxu1 %v4977_v51  ;;  %v4987_v51 = vld [vmem:[%s6421_s2 + $0x68] sm:$0xff]  }
  0x4f   : > { %1349 = vst.msk [vmem:[#allocation2 + $0x60] sm:$0xff] %vm1335_vm3, %v5132_v26  ;;  %1351 = vst.msk [vmem:[#allocation2 + $0x70] sm:$0xff] %vm1335_vm3, %v5132_v26  ;;  %4408 = vmatprep.subr.bf16.mxu1 %v4978_v33 }
  0x50   : > { %4351 = vmatmul.mubr.msk.bf16.vlgmr.msra.gmra.mrb[0].mxu0 %vm359_vm2, %v806_v31  ;;  %v6517_v31 = vld [vmem:[#allocation29_spill] sm:$0xff]  ;;  %1350 = vst.msk [vmem:[#allocation2 + $0x68] sm:$0x3] %vm1337_vm4, %v5132_v26  ;;  %1352 = vst.msk [vmem:[#allocation2 + $0x78] sm:$0x3] %vm1337_vm4, %v5132_v26 }
  0x51   : > { %4359 = vmatpush3.bf16.msra.mxu0 %v5307_v36  ;;  %4354 = vmatprep.mubr.msk.bf16.mxu0 %vm359_vm2, %v807_v48  ;;  %v917_v36 = vsel %vm320_vm1, %v6495_v45, %v6493_v52  ;;  %v6518_v48 = vrot.slane %v6517_v31, 1  ;;  %v6525_v52 = vld [vmem:[#allocation10_spill] sm:$0xff]  ;;  %v6528_v45 = vld [vmem:[#allocation15_spill] sm:$0xff]  ;;  %1353 = vst.msk [vmem:[#allocation2 + $0x80] sm:$0xff] %vm1335_vm3, %v5132_v26  ;;  %1355 = vst.msk [vmem:[#allocation2 + $0x90] sm:$0xff] %vm1335_vm3, %v5132_v26 }
  0x52   : > { %4919 = vmatprep.subr.msk.bf16.mxu0 %vm372_vm0, %v6500_v56  ;;  %v947_v53 = vpack.c.bf16 %v920_v40, %v917_v36  ;;  %v6526_v8 = vpack.c.bf16 %v6524_v20, %v6525_v52  ;;  %v6529_v36 = vld [vmem:[#allocation12_spill] sm:$0xff]  ;;  %v6533_v40 = vpack.c.bf16 %v6531_v55, %v6532_v28  ;;  %v1142_v56 = vpack.c.bf16 %v5567_v54, %v5563_v22  ;;  %v6535_v22 = vld [vmem:[#allocation17_spill] sm:$0xff] }
  0x53   : > { %v938_v30 = vsel %vm320_vm1, %v6519_v5, %v6518_v48  ;;  %v6530_v37 = vpack.c.bf16 %v6528_v45, %v6529_v36  ;;  %v6536_v54 = vpack.c.bf16 %v6534_v61, %v6535_v22  ;;  %1354 = vst.msk [vmem:[#allocation2 + $0x88] sm:$0x3] %vm1337_vm4, %v5132_v26  ;;  %1356 = vst.msk [vmem:[#allocation2 + $0x98] sm:$0x3] %vm1337_vm4, %v5132_v26  ;;  %4409 = vmatpush3.bf16.msra.mxu1 %v4978_v33  ;;  %v1391_v34 = vld [vmem:[#allocation2 + $0x1] sm:$0xff]  ;;  %v4982_v52 = vld [vmem:[%s6421_s2 + $0x10] sm:$0xff]  }
  0x54   : > { %v950_v43 = vpack.c.bf16 %v938_v30, %v935_v24  ;;  %4922 = vmatprep.subr.msk.bf16.mxu1 %vm1468_vm5, %v4979_v46  ;;  %v1366_v45 = vld [vmem:[#allocation2] sm:$0xff]  ;;  %v4985_v22 = vld [vmem:[%s6421_s2 + $0x28] sm:$0xff]  }
  0x55   : > { %v4984_v61 = vld [vmem:[%s6421_s2 + $0x20] sm:$0xff]  }
  0x57   : > { %4411 = vmatpush3.bf16.msra.mxu1 %v1470_v39 }
  0x58   : > { %4355 = vmatmul.mubr.msk.bf16.gmra.mrb[4].mxu0 %vm359_vm2, %v808_v18  ;;  %v1143_v18 = vpack.c.bf16 %v341_v14, %v5570_v17 }
  0x59   : > { %4360 = vmatprep.mubr.msk.bf16.mxu0 %vm359_vm2, %v947_v53  ;;  %v1260_v53 = vsel %vm372_vm0, %v3812_v7, 0 }
  0x60   : > { %4361 = vmatmul.mubr.msk.bf16.vlgmr.msra.gmra.mrb[0].mxu0 %vm359_vm2, %v948_v49 }
  0x61   : > { %4369 = vmatpush3.bf16.msra.mxu0 %v6513_v29  ;;  %4364 = vmatprep.mubr.msk.bf16.mxu0 %vm359_vm2, %v949_v38 }
  0x62   : > { %4920 = vmatprep.subr.msk.bf16.mxu0 %vm372_vm0, %v6520_v32 }
  0x68   : > { %4365 = vmatmul.mubr.msk.bf16.gmra.mrb[4].mxu0 %vm359_vm2, %v950_v43 }
  0x69   : > { %4370 = vmatprep.mubr.msk.bf16.mxu0 %vm359_vm2, %v6523_v41 }
  0x70   : > { %4371 = vmatmul.mubr.msk.bf16.vlgmr.msra.gmra.mrb[0].mxu0 %vm359_vm2, %v6526_v8 }
  0x71   : > { %4379 = vmatpush3.bf16.msra.mxu0 %v6527_v57  ;;  %4374 = vmatprep.mubr.msk.bf16.mxu0 %vm359_vm2, %v6530_v37 }
  0x72   : > { %4921 = vmatprep.subr.msk.bf16.mxu0 %vm372_vm0, %v3812_v7 }
  0x78   : > { %4375 = vmatmul.mubr.msk.bf16.gmra.mrb[4].mxu0 %vm359_vm2, %v6533_v40  ;;  %v4983_v40 = vld [vmem:[%s6421_s2 + $0x18] sm:$0xff]  }
  0x79   : > { %4380 = vmatprep.mubr.msk.bf16.mxu0 %vm359_vm2, %v1141_v50 }
  0x80   : > { %4381 = vmatmul.mubr.msk.bf16.vlgmr.msra.gmra.mrb[0].mxu0 %vm359_vm2, %v1142_v56 }
  0x81   : > { %4389 = vmatpush3.bf16.msra.mxu0 %v1260_v53  ;;  %4384 = vmatprep.mubr.msk.bf16.mxu0 %vm359_vm2, %v1143_v18 }
  0x82   : > { %4596 = vmatprep.subr.bf16.mxu0 %v5132_v26 }
  0x88   : > { %4385 = vmatmul.mubr.msk.bf16.gmra.mrb[4].mxu0 %vm359_vm2, %v1144_v35 }
  0x89   : > { %4390 = vmatprep.mubr.msk.bf16.mxu0 %vm359_vm2, %v1241_v10  ;;  %v4980_v10 = vld [vmem:[%s6421_s2] sm:$0xff]  }
  0x8a   : > { %4420 = vmatprep.subr.bf16.mxu1 %v4980_v10 }
  0x90   : > { %4391 = vmatmul.mubr.msk.bf16.vlgmr.msra.gmra.mrb[0].mxu0 %vm359_vm2, %v6536_v54  ;;  %v4986_v54 = vld [vmem:[%s6421_s2 + $0x30] ss:$0 sps:$4 sm:$0x33]  }
  0x91   : > { %4394 = vmatprep.mubr.msk.bf16.mxu0 %vm359_vm2, %v1243_v13  ;;  %v1585_v4 = vsel %vm1468_vm5, %v4986_v54, 0 }
  0x98   : > { %4395 = vmatmul.mubr.msk.bf16.gmra.mrb[4].mxu0 %vm359_vm2, %v1244_v16 }
  0x99   : > { %4600 = vmatprep.mubr.msk.bf16.mxu0 %vm5133_vm6, %v5132_v26 }
 0x110   : > { %v4312_v13 = vpop.f32.mrb[0].mxu1 }
 0x111   : > { %v410_v17 = vpop.f32.mrb[1].mxu1 }
 0x112   : > { %v4313_v19 = vpop.f32.mrb[2].mxu1 }
 0x113   : > { %v413_v16 = vpop.f32.mrb[3].mxu1 }
 0x118   : > { %v4316_v14 = vpop.f32.mrb[4].mxu1 }
 0x119   : > { %v426_v21 = vpop.f32.mrb[5].mxu1 }
 0x11a   : > { %v4317_v27 = vpop.f32.mrb[6].mxu1 }
 0x11b   : > { %v429_v42 = vpop.f32.mrb[7].mxu1 }
 0x163   : > { %v4392_v60 = vpop.f32.mrb[0].mxu0 }
 0x164   : > { %v4724_v58 = vadd.f32 %v4392_v60, %v4312_v13  ;;  %v1296_v23 = vpop.f32.mrb[1].mxu0  ;;  %v4990_v60 = vld [vmem:[%s6421_s2 + $0x80] sm:$0xff]  }
 0x165   : > { %v4725_v9 = vadd.f32 %v1296_v23, %v410_v17  ;;  %v4393_v11 = vpop.f32.mrb[2].mxu0  ;;  %v4988_v17 = vld [vmem:[%s6421_s2 + $0x70] sm:$0xff]   ;;  %v4991_v23 = vld [vmem:[%s6421_s2 + $0x88] sm:$0xff]  }
 0x166   : > { %1360 = vst.msk [vmem:[#allocation2 + $0x31] sm:$0xff] %vm1335_vm3, %v4724_v58  ;;  %v4726_v12 = vadd.f32 %v4393_v11, %v4313_v19  ;;  %v1299_v3 = vpop.f32.mrb[3].mxu0  ;;  %v4993_v11 = vld [vmem:[%s6421_s2 + $0x98] ss:$0 sps:$4 sm:$0x33]  }
 0x167   : > { %1358 = vst.msk [vmem:[#allocation2 + $0x11] sm:$0xff] %vm1335_vm3, %v4725_v9  ;;  %v4727_v6 = vadd.f32 %v1299_v3, %v413_v16  ;;  %v4989_v16 = vld [vmem:[%s6421_s2 + $0x78] sm:$0xff]   ;;  %v4992_v9 = vld [vmem:[%s6421_s2 + $0x90] sm:$0xff]  }
 0x168   : > { %1361 = vst.msk [vmem:[#allocation2 + $0x41] sm:$0xff] %vm1335_vm3, %v4726_v12  ;;  %v1726_v12 = vsel %vm1468_vm5, %v4993_v11, 0  ;;  %v4994_v3 = vld [vmem:[%s6421_s2 + $0x9c] sm:$0xff]  }
 0x169   : > { %1359 = vst.msk [vmem:[#allocation2 + $0x21] sm:$0xff] %vm1335_vm3, %v4727_v6 }
 0x16b   : > { %v4396_v62 = vpop.f32.mrb[4].mxu0 }
 0x16c   : > { %v4728_v47 = vadd.f32 %v4396_v62, %v4316_v14  ;;  %v1312_v2 = vpop.f32.mrb[5].mxu0  ;;  %v4995_v62 = vld [vmem:[%s6421_s2 + $0xa4] sm:$0xff]  }
 0x16d   : > { %v4729_v15 = vadd.f32 %v1312_v2, %v426_v21  ;;  %v4397_v63 = vpop.f32.mrb[6].mxu0  ;;  %v5810_v0 = vld [vmem:[#allocation2 + $0x31] sm:$0xff]  ;;  %v1648_v21 = vld [vmem:[#allocation2 + $0x2] sm:$0xff] }
 0x16e   : > { %1364 = vst.msk [vmem:[#allocation2 + $0x71] sm:$0xff] %vm1335_vm3, %v4728_v47  ;;  %v4730_v49 = vadd.f32 %v4397_v63, %v4317_v27  ;;  %v1315_v38 = vpop.f32.mrb[7].mxu0  ;;  %v5808_v29 = vld [vmem:[#allocation2 + $0x11] sm:$0xff] }
 0x16f   : > { %1362 = vst.msk [vmem:[#allocation2 + $0x51] sm:$0xff] %vm1335_vm3, %v4729_v15  ;;  %v4731_v25 = vadd.f32 %v1315_v38, %v429_v42  ;;  %v1399_v1 = vpack.c.bf16 %v5808_v29, %v1391_v34  ;;  %v5814_v24 = vld [vmem:[#allocation2 + $0x41] sm:$0xff]  ;;  %v5816_v31 = vld [vmem:[#allocation2 + $0x32] sm:$0xff] }
 0x170   : > { %v5818_v48 = vld [vmem:[#allocation2 + $0x42] sm:$0xff]  ;;  %1365 = vst.msk [vmem:[#allocation2 + $0x81] sm:$0xff] %vm1335_vm3, %v4730_v49  ;;  %v1947_v32 = vpack.c.bf16 %v5814_v24, %v5810_v0  ;;  %v5838_v41 = vld [vmem:[#allocation2 + $0x12] sm:$0xff] }
 0x171   : > { %v5821_v5 = vld [vmem:[#allocation2 + $0x21] sm:$0xff]  ;;  %v2092_v43 = vpack.c.bf16 %v5818_v48, %v5816_v31  ;;  %1363 = vst.msk [vmem:[#allocation2 + $0x61] sm:$0xff] %vm1335_vm3, %v4731_v25  ;;  %4412 = vmatprep.mubr.msk.bf16.mxu1 %vm1335_vm3, %v1399_v1  ;;  %v5855_v36 = vld [vmem:[#allocation2 + $0x10] sm:$0xff]  ;;  %v1656_v58 = vpack.c.bf16 %v5838_v41, %v1648_v21  ;;  %v5000_v1 = vld [vmem:[%s6421_s2 + $0xcc] ss:$0 sps:$4 sm:$0x33]  }
 0x172   : > { %v5823_v30 = vld [vmem:[#allocation2 + $0x22] sm:$0xff]  ;;  %v5833_v44 = vpack.c.bf16 %v5810_v0, %v5821_v5  ;;  %v1946_v7 = vpack.c.bf16 %v5821_v5, %v5808_v29  ;;  %v1374_v18 = vpack.c.bf16 %v5855_v36, %v1366_v45  ;;  %v5898_v39 = vld [vmem:[#allocation2 + $0x30] sm:$0xff] }
 0x173   : > { %v2091_v20 = vpack.c.bf16 %v5823_v30, %v5838_v41  ;;  %v1368_v33 = vld [vmem:[#allocation2 + $0x20] sm:$0xff]  ;;  %v5947_v6 = vpack.c.bf16 %v5816_v31, %v5823_v30  ;;  %v4996_v2 = vld [vmem:[%s6421_s2 + $0xac] sm:$0xff]   ;;  %v4997_v63 = vld [vmem:[%s6421_s2 + $0xb4] sm:$0xff]  }
 0x174   : > { %4413 = vmatmul.mubr.msk.bf16.vlgmr.msra.gmra.mrb[8].mxu1 %vm1335_vm3, %v5833_v44  ;;  %v5903_v13 = vld [vmem:[#allocation2 + $0x40] sm:$0xff]  ;;  %v1801_v49 = vpack.c.bf16 %v1368_v33, %v5855_v36  ;;  %v5002_v36 = vld [vmem:[%s6421_s2 + $0xd8] sm:$0xff]   ;;  %v5037_v5 = vld [vmem:[%s6422_s3 + $0x8] ss:$0 sps:$4 sm:$0x33]  }
 0x175   : > { %4421 = vmatpush3.bf16.msra.mxu1 %v4980_v10  ;;  %v5859_v50 = vld [vmem:[#allocation2 + $0x71] sm:$0xff]  ;;  %v5901_v10 = vpack.c.bf16 %v5898_v39, %v1368_v33  ;;  %v4998_v38 = vld [vmem:[%s6421_s2 + $0xbc] sm:$0xff]   ;;  %v4999_v25 = vld [vmem:[%s6421_s2 + $0xc4] sm:$0xff]   ;;  %v1802_v45 = vpack.c.bf16 %v5903_v13, %v5898_v39  ;;  %v2683_v39 = vsel %vm1468_vm5, %v5037_v5, 0 }
 0x176   : > { %4422 = vmatprep.subr.bf16.mxu1 %v4981_v59  ;;  %v5849_v8 = vld [vmem:[#allocation2 + $0x51] sm:$0xff]  ;;  %v5007_v33 = vld [vmem:[%s6421_s2 + $0x100] ss:$0 sps:$4 sm:$0x33]  }
 0x177   : > { %v5853_v57 = vpack.c.bf16 %v5849_v8, %v5814_v24  ;;  %v5872_v56 = vld [vmem:[#allocation2 + $0x52] sm:$0xff]  ;;  %v5036_v29 = vld [vmem:[%s6422_s3] sm:$0xff]   ;;  %v5043_v5 = vld [vmem:[%s6422_s3 + $0x2c] ss:$0 sps:$4 sm:$0x33]  }
 0x178   : > { %v5857_v37 = vld [vmem:[#allocation2 + $0x61] sm:$0xff]  ;;  %v5896_v46 = vld [vmem:[#allocation2 + $0x50] sm:$0xff]  ;;  %v5954_v47 = vpack.c.bf16 %v5872_v56, %v5818_v48  ;;  %4597 = vmatpush3.bf16.msra.mxu0 %v5036_v29  ;;  %v5015_v41 = vld [vmem:[%s6421_s2 + $0x138] sm:$0xff]  }
 0x179   : > { %4423 = vmatpush3.bf16.msra.mxu1 %v4981_v59  ;;  %v5861_v55 = vld [vmem:[#allocation2 + $0x62] sm:$0xff]  ;;  %4416 = vmatprep.mubr.msk.bf16.mxu1 %vm1335_vm3, %v5853_v57  ;;  %v5867_v28 = vpack.c.bf16 %v5859_v50, %v5857_v37  ;;  %v1948_v53 = vpack.c.bf16 %v5857_v37, %v5849_v8  ;;  %v5910_v19 = vpack.c.bf16 %v5896_v46, %v5903_v13  ;;  %v5919_v27 = vld [vmem:[#allocation2 + $0x70] sm:$0xff]  ;;  %v1871_v59 = vsel %vm1468_vm5, %v5000_v1, 0  ;;  %v5019_v48 = vld [vmem:[%s6421_s2 + $0x158] sm:$0xff]  }
 0x17a   : > { %4424 = vmatprep.subr.bf16.mxu1 %v4982_v52  ;;  %v2093_v35 = vpack.c.bf16 %v5861_v55, %v5872_v56  ;;  %v1372_v14 = vld [vmem:[#allocation2 + $0x60] sm:$0xff]  ;;  %v5963_v34 = vld [vmem:[#allocation2 + $0x72] sm:$0xff]  ;;  %4598 = vmatprep.subr.bf16.mxu0 %v5132_v26  ;;  %v5017_v37 = vld [vmem:[%s6421_s2 + $0x148] sm:$0xff]  }
 0x17b   : > { %v5922_v42 = vpack.c.bf16 %v5919_v27, %v1372_v14  ;;  %v5967_v15 = vpack.c.bf16 %v5963_v34, %v5861_v55  ;;  %v5009_v13 = vld [vmem:[%s6421_s2 + $0x10c] sm:$0xff]   ;;  %v5011_v0 = vld [vmem:[%s6421_s2 + $0x11c] sm:$0xff]   ;;  %v5012_v24 = vld [vmem:[%s6421_s2 + $0x124] sm:$0xff]  }
 0x17c   : > { %4417 = vmatmul.mubr.msk.bf16.gmra.mrb[12].mxu1 %vm1335_vm3, %v5867_v28  ;;  %4599 = vmatpush3.bf16.msra.mxu0 %v2683_v39  ;;  %v5014_v8 = vld [vmem:[%s6421_s2 + $0x134] ss:$0 sps:$4 sm:$0x33]   ;;  %v5021_v55 = vld [vmem:[%s6421_s2 + $0x168] ss:$0 sps:$4 sm:$0x33]  }
 0x17d   : > { %4425 = vmatpush3.bf16.msra.mxu1 %v4982_v52  ;;  %4434 = vmatprep.mubr.msk.bf16.mxu1 %vm1335_vm3, %v1374_v18  ;;  %v5001_v52 = vld [vmem:[%s6421_s2 + $0xd0] sm:$0xff]   ;;  %v5003_v18 = vld [vmem:[%s6421_s2 + $0xe0] sm:$0xff]   ;;  %v2161_v30 = vsel %vm1468_vm5, %v5014_v8, 0  ;;  %v2307_v56 = vsel %vm1468_vm5, %v5021_v55, 0 }
 0x17e   : > { %4426 = vmatprep.subr.bf16.mxu1 %v4983_v40  ;;  %4604 = vmatprep.subr.bf16.mxu0 %v5132_v26  ;;  %v5018_v31 = vld [vmem:[%s6421_s2 + $0x150] sm:$0xff]   ;;  %v5024_v21 = vld [vmem:[%s6421_s2 + $0x17c] sm:$0xff]  }
 0x181   : > { %4427 = vmatpush3.bf16.msra.mxu1 %v4983_v40  ;;  %v1803_v40 = vpack.c.bf16 %v1372_v14, %v5896_v46  ;;  %v5008_v46 = vld [vmem:[%s6421_s2 + $0x104] sm:$0xff]  }
 0x182   : > { %4428 = vmatprep.subr.bf16.mxu1 %v4984_v61 }
 0x185   : > { %4429 = vmatpush3.bf16.msra.mxu1 %v4984_v61  ;;  %v6001_v61 = vld [vmem:[#allocation2 + $0x80] sm:$0xff] }
 0x186   : > { %4430 = vmatprep.subr.bf16.mxu1 %v4985_v22 }
 0x189   : > { %4431 = vmatpush3.bf16.msra.mxu1 %v4985_v22  ;;  %v1804_v22 = vpack.c.bf16 %v6001_v61, %v5919_v27  ;;  %v2236_v27 = vld [vmem:[#allocation2 + $0x90] sm:$0xff] }
 0x18a   : > { %4923 = vmatprep.subr.msk.bf16.mxu1 %vm1468_vm5, %v4986_v54  ;;  %v5004_v54 = vld [vmem:[%s6421_s2 + $0xe8] sm:$0xff]  }
 0x18d   : > { %4433 = vmatpush3.bf16.msra.mxu1 %v1585_v4  ;;  %v5005_v4 = vld [vmem:[%s6421_s2 + $0xf0] sm:$0xff]  }
 0x18e   : > { %4442 = vmatprep.subr.bf16.mxu1 %v4987_v51 }
 0x190   : > { %4435 = vmatmul.mubr.msk.bf16.vlgmr.msra.gmra.mrb[8].mxu1 %vm1335_vm3, %v5901_v10 }
 0x191   : > { %4438 = vmatprep.mubr.msk.bf16.mxu1 %vm1335_vm3, %v5910_v19  ;;  %4443 = vmatpush3.bf16.msra.mxu1 %v4987_v51  ;;  %v5006_v51 = vld [vmem:[%s6421_s2 + $0xf8] sm:$0xff]  }
 0x192   : > { %4444 = vmatprep.subr.bf16.mxu1 %v4988_v17 }
 0x195   : > { %4445 = vmatpush3.bf16.msra.mxu1 %v4988_v17  ;;  %v5010_v17 = vld [vmem:[%s6421_s2 + $0x114] sm:$0xff]  }
 0x196   : > { %4446 = vmatprep.subr.bf16.mxu1 %v4989_v16 }
 0x198   : > { %4439 = vmatmul.mubr.msk.bf16.gmra.mrb[12].mxu1 %vm1335_vm3, %v5922_v42 }
 0x199   : > { %4447 = vmatpush3.bf16.msra.mxu1 %v4989_v16  ;;  %4456 = vmatprep.mubr.msk.bf16.mxu1 %vm1335_vm3, %v1656_v58  ;;  %v6050_v16 = vld [vmem:[#allocation2 + $0x81] sm:$0xff] }
 0x19a   : > { %4448 = vmatprep.subr.bf16.mxu1 %v4990_v60  ;;  %v1949_v14 = vpack.c.bf16 %v6050_v16, %v5859_v50  ;;  %v6090_v50 = vld [vmem:[#allocation2 + $0x82] sm:$0xff] }
 0x19b   : > { %v5025_v58 = vld [vmem:[%s6421_s2 + $0x184] sm:$0xff]  }
 0x19d   : > { %4449 = vmatpush3.bf16.msra.mxu1 %v4990_v60  ;;  %v2240_v60 = vpack.c.bf16 %v2236_v27, %v6001_v61  ;;  %v5056_v27 = vld [vmem:[%s6422_s3 + $0x78] sm:$0xff]  }
 0x19e   : > { %4450 = vmatprep.subr.bf16.mxu1 %v4991_v23 }
 0x1a1   : > { %4451 = vmatpush3.bf16.msra.mxu1 %v4991_v23  ;;  %v5028_v23 = vld [vmem:[%s6421_s2 + $0x19c] ss:$0 sps:$4 sm:$0x33]  }
 0x1a2   : > { %4452 = vmatprep.subr.bf16.mxu1 %v4992_v9 }
 0x1a5   : > { %4453 = vmatpush3.bf16.msra.mxu1 %v4992_v9  ;;  %v5029_v9 = vld [vmem:[%s6421_s2 + $0x1a0] sm:$0xff]  }
 0x1a6   : > { %4924 = vmatprep.subr.msk.bf16.mxu1 %vm1468_vm5, %v4993_v11  ;;  %v5030_v11 = vld [vmem:[%s6421_s2 + $0x1a8] sm:$0xff]  }
 0x1a9   : > { %4455 = vmatpush3.bf16.msra.mxu1 %v1726_v12  ;;  %v5031_v12 = vld [vmem:[%s6421_s2 + $0x1b0] sm:$0xff]  }
 0x1aa   : > { %4464 = vmatprep.subr.bf16.mxu1 %v4994_v3 }
 0x1ac   : > { %4457 = vmatmul.mubr.msk.bf16.vlgmr.msra.gmra.mrb[8].mxu1 %vm1335_vm3, %v5947_v6 }
 0x1ad   : > { %4460 = vmatprep.mubr.msk.bf16.mxu1 %vm1335_vm3, %v5954_v47  ;;  %4465 = vmatpush3.bf16.msra.mxu1 %v4994_v3  ;;  %v2381_v3 = vld [vmem:[#allocation2 + $0x91] sm:$0xff] }
 0x1ae   : > { %4466 = vmatprep.subr.bf16.mxu1 %v4995_v62 }
 0x1b1   : > { %4467 = vmatpush3.bf16.msra.mxu1 %v4995_v62  ;;  %v2385_v62 = vpack.c.bf16 %v2381_v3, %v6050_v16  ;;  %v5046_v16 = vld [vmem:[%s6422_s3 + $0x3c] sm:$0xff]   ;;  %v5061_v3 = vld [vmem:[%s6422_s3 + $0x98] ss:$0 sps:$4 sm:$0x33]  }
 0x1b2   : > { %4468 = vmatprep.subr.bf16.mxu1 %v4996_v2 }
 0x1b4   : > { %4461 = vmatmul.mubr.msk.bf16.gmra.mrb[12].mxu1 %vm1335_vm3, %v5967_v15 }
 0x1b5   : > { %4469 = vmatpush3.bf16.msra.mxu1 %v4996_v2  ;;  %4478 = vmatprep.mubr.msk.bf16.mxu1 %vm1335_vm3, %v1801_v49  ;;  %v5032_v2 = vld [vmem:[%s6421_s2 + $0x1b8] sm:$0xff]  }
 0x1b6   : > { %4470 = vmatprep.subr.bf16.mxu1 %v4997_v63 }
 0x1b9   : > { %4471 = vmatpush3.bf16.msra.mxu1 %v4997_v63  ;;  %v2526_v63 = vld [vmem:[#allocation2 + $0x92] sm:$0xff] }
 0x1ba   : > { %4472 = vmatprep.subr.bf16.mxu1 %v4998_v38  ;;  %v2530_v49 = vpack.c.bf16 %v2526_v63, %v6090_v50 }
 0x1bd   : > { %4473 = vmatpush3.bf16.msra.mxu1 %v4998_v38 }
 0x1be   : > { %4474 = vmatprep.subr.bf16.mxu1 %v4999_v25 }
 0x1c1   : > { %4475 = vmatpush3.bf16.msra.mxu1 %v4999_v25 }
 0x1c2   : > { %4925 = vmatprep.subr.msk.bf16.mxu1 %vm1468_vm5, %v5000_v1  ;;  %v5038_v1 = vld [vmem:[%s6422_s3 + $0xc] sm:$0xff]  }
 0x1c5   : > { %4477 = vmatpush3.bf16.msra.mxu1 %v1871_v59 }
 0x1c6   : > { %4486 = vmatprep.subr.bf16.mxu1 %v5001_v52 }
 0x1c8   : > { %4479 = vmatmul.mubr.msk.bf16.vlgmr.msra.gmra.mrb[8].mxu1 %vm1335_vm3, %v1802_v45 }
 0x1c9   : > { %4482 = vmatprep.mubr.msk.bf16.mxu1 %vm1335_vm3, %v1803_v40  ;;  %4487 = vmatpush3.bf16.msra.mxu1 %v5001_v52 }
 0x1ca   : > { %4488 = vmatprep.subr.bf16.mxu1 %v5002_v36 }
 0x1cd   : > { %4489 = vmatpush3.bf16.msra.mxu1 %v5002_v36 }
 0x1ce   : > { %4490 = vmatprep.subr.bf16.mxu1 %v5003_v18 }
 0x1d0   : > { %4483 = vmatmul.mubr.msk.bf16.gmra.mrb[12].mxu1 %vm1335_vm3, %v1804_v22  ;;  %v5040_v22 = vld [vmem:[%s6422_s3 + $0x18] sm:$0xff]  }
 0x1d1   : > { %4491 = vmatpush3.bf16.msra.mxu1 %v5003_v18  ;;  %4500 = vmatprep.mubr.msk.bf16.mxu1 %vm1335_vm3, %v1946_v7  ;;  %v2016_v7 = vsel %vm1468_vm5, %v5007_v33, 0 }
 0x1d2   : > { %4492 = vmatprep.subr.bf16.mxu1 %v5004_v54 }
 0x1d5   : > { %4493 = vmatpush3.bf16.msra.mxu1 %v5004_v54 }
 0x1d6   : > { %4494 = vmatprep.subr.bf16.mxu1 %v5005_v4 }
 0x1d9   : > { %4495 = vmatpush3.bf16.msra.mxu1 %v5005_v4  ;;  %v5041_v4 = vld [vmem:[%s6422_s3 + $0x20] ss:$0 sps:$4 sm:$0x33]  }
 0x1da   : > { %4496 = vmatprep.subr.bf16.mxu1 %v5006_v51 }
 0x1dd   : > { %4497 = vmatpush3.bf16.msra.mxu1 %v5006_v51  ;;  %v2806_v51 = vsel %vm1468_vm5, %v5041_v4, 0 }
 0x1de   : > { %4926 = vmatprep.subr.msk.bf16.mxu1 %vm1468_vm5, %v5007_v33  ;;  %v5042_v33 = vld [vmem:[%s6422_s3 + $0x24] sm:$0xff]  }
 0x1e1   : > { %4499 = vmatpush3.bf16.msra.mxu1 %v2016_v7  ;;  %v2867_v7 = vsel %vm1468_vm5, %v5043_v5, 0 }
 0x1e2   : > { %4508 = vmatprep.subr.bf16.mxu1 %v5008_v46 }
 0x1e4   : > { %4501 = vmatmul.mubr.msk.bf16.vlgmr.msra.gmra.mrb[8].mxu1 %vm1335_vm3, %v1947_v32  ;;  %v5013_v32 = vld [vmem:[%s6421_s2 + $0x12c] sm:$0xff]  }
 0x1e5   : > { %4504 = vmatprep.mubr.msk.bf16.mxu1 %vm1335_vm3, %v1948_v53  ;;  %4509 = vmatpush3.bf16.msra.mxu1 %v5008_v46  ;;  %v2094_v53 = vpack.c.bf16 %v6090_v50, %v5963_v34  ;;  %v5035_v34 = vld [vmem:[%s6421_s2 + $0x1d0] ss:$0 sps:$4 sm:$0x33]   ;;  %v5051_v50 = vld [vmem:[%s6422_s3 + $0x5c] ss:$0 sps:$4 sm:$0x33]  }
 0x1e6   : > { %4510 = vmatprep.subr.bf16.mxu1 %v5009_v13  ;;  %v5044_v46 = vld [vmem:[%s6422_s3 + $0x30] sm:$0xff]  }
 0x1e9   : > { %4511 = vmatpush3.bf16.msra.mxu1 %v5009_v13  ;;  %v5045_v13 = vld [vmem:[%s6422_s3 + $0x38] ss:$0 sps:$4 sm:$0x33]  }
 0x1ea   : > { %4512 = vmatprep.subr.bf16.mxu1 %v5010_v17 }
 0x1ec   : > { %4505 = vmatmul.mubr.msk.bf16.gmra.mrb[12].mxu1 %vm1335_vm3, %v1949_v14 }
 0x1ed   : > { %4513 = vmatpush3.bf16.msra.mxu1 %v5010_v17  ;;  %4522 = vmatprep.mubr.msk.bf16.mxu1 %vm1335_vm3, %v2091_v20  ;;  %v5016_v20 = vld [vmem:[%s6421_s2 + $0x140] sm:$0xff]   ;;  %v2928_v17 = vsel %vm1468_vm5, %v5045_v13, 0 }
 0x1ee   : > { %4514 = vmatprep.subr.bf16.mxu1 %v5011_v0 }
 0x1f1   : > { %4515 = vmatpush3.bf16.msra.mxu1 %v5011_v0  ;;  %v5047_v0 = vld [vmem:[%s6422_s3 + $0x44] ss:$0 sps:$4 sm:$0x33]  }
 0x1f2   : > { %4516 = vmatprep.subr.bf16.mxu1 %v5012_v24 }
 0x1f5   : > { %4517 = vmatpush3.bf16.msra.mxu1 %v5012_v24  ;;  %v2990_v24 = vsel %vm1468_vm5, %v5047_v0, 0 }
 0x1f6   : > { %4518 = vmatprep.subr.bf16.mxu1 %v5013_v32 }
 0x1f9   : > { %4519 = vmatpush3.bf16.msra.mxu1 %v5013_v32  ;;  %v5048_v32 = vld [vmem:[%s6422_s3 + $0x48] sm:$0xff]  }
 0x1fa   : > { %4927 = vmatprep.subr.msk.bf16.mxu1 %vm1468_vm5, %v5014_v8 }
 0x1fd   : > { %4521 = vmatpush3.bf16.msra.mxu1 %v2161_v30  ;;  %v5049_v30 = vld [vmem:[%s6422_s3 + $0x50] ss:$0 sps:$4 sm:$0x33]  }
 0x1fe   : > { %4530 = vmatprep.subr.bf16.mxu1 %v5015_v41 }
 0x200   : > { %4523 = vmatmul.mubr.msk.bf16.vlgmr.msra.gmra.mrb[8].mxu1 %vm1335_vm3, %v2092_v43  ;;  %v5020_v43 = vld [vmem:[%s6421_s2 + $0x160] sm:$0xff]  }
 0x201   : > { %4526 = vmatprep.mubr.msk.bf16.mxu1 %vm1335_vm3, %v2093_v35  ;;  %4531 = vmatpush3.bf16.msra.mxu1 %v5015_v41  ;;  %v5022_v35 = vld [vmem:[%s6421_s2 + $0x16c] sm:$0xff]   ;;  %v3051_v41 = vsel %vm1468_vm5, %v5049_v30, 0 }
 0x202   : > { %4532 = vmatprep.subr.bf16.mxu1 %v5016_v20 }
 0x205   : > { %4533 = vmatpush3.bf16.msra.mxu1 %v5016_v20  ;;  %v5050_v20 = vld [vmem:[%s6422_s3 + $0x54] sm:$0xff]  }
 0x206   : > { %4534 = vmatprep.subr.bf16.mxu1 %v5017_v37 }
 0x208   : > { %4527 = vmatmul.mubr.msk.bf16.gmra.mrb[12].mxu1 %vm1335_vm3, %v2094_v53  ;;  %v3112_v53 = vsel %vm1468_vm5, %v5051_v50, 0 }
 0x209   : > { %4535 = vmatpush3.bf16.msra.mxu1 %v5017_v37  ;;  %4544 = vmatprep.mubr.msk.bf16.mxu1 %vm1335_vm3, %v5901_v10  ;;  %v5023_v10 = vld [vmem:[%s6421_s2 + $0x174] sm:$0xff]  }
 0x20a   : > { %4536 = vmatprep.subr.bf16.mxu1 %v5018_v31 }
 0x20d   : > { %4537 = vmatpush3.bf16.msra.mxu1 %v5018_v31  ;;  %v5052_v31 = vld [vmem:[%s6422_s3 + $0x60] sm:$0xff]  }
 0x20e   : > { %4538 = vmatprep.subr.bf16.mxu1 %v5019_v48 }
 0x211   : > { %4539 = vmatpush3.bf16.msra.mxu1 %v5019_v48 }
 0x212   : > { %4540 = vmatprep.subr.bf16.mxu1 %v5020_v43 }
 0x215   : > { %4541 = vmatpush3.bf16.msra.mxu1 %v5020_v43  ;;  %v5053_v43 = vld [vmem:[%s6422_s3 + $0x68] ss:$0 sps:$4 sm:$0x33]  }
 0x216   : > { %4928 = vmatprep.subr.msk.bf16.mxu1 %vm1468_vm5, %v5021_v55  ;;  %v3173_v55 = vsel %vm1468_vm5, %v5053_v43, 0 }
 0x219   : > { %4543 = vmatpush3.bf16.msra.mxu1 %v2307_v56  ;;  %v5054_v56 = vld [vmem:[%s6422_s3 + $0x6c] sm:$0xff]  }
 0x21a   : > { %4552 = vmatprep.subr.bf16.mxu1 %v5022_v35 }
 0x21c   : > { %4545 = vmatmul.mubr.msk.bf16.vlgmr.msra.gmra.mrb[8].mxu1 %vm1335_vm3, %v5910_v19  ;;  %v5026_v19 = vld [vmem:[%s6421_s2 + $0x18c] sm:$0xff]  }
 0x21d   : > { %4548 = vmatprep.mubr.msk.bf16.mxu1 %vm1335_vm3, %v5922_v42  ;;  %4553 = vmatpush3.bf16.msra.mxu1 %v5022_v35  ;;  %v5027_v42 = vld [vmem:[%s6421_s2 + $0x194] sm:$0xff]  }
 0x21e   : > { %4554 = vmatprep.subr.bf16.mxu1 %v5023_v10 }
 0x221   : > { %4555 = vmatpush3.bf16.msra.mxu1 %v5023_v10  ;;  %v5055_v10 = vld [vmem:[%s6422_s3 + $0x74] ss:$0 sps:$4 sm:$0x33]  }
 0x222   : > { %4556 = vmatprep.subr.bf16.mxu1 %v5024_v21 }
 0x224   : > { %4549 = vmatmul.mubr.msk.bf16.gmra.mrb[12].mxu1 %vm1335_vm3, %v2240_v60 }
 0x225   : > { %4557 = vmatpush3.bf16.msra.mxu1 %v5024_v21  ;;  %4566 = vmatprep.mubr.msk.bf16.mxu1 %vm1335_vm3, %v5833_v44  ;;  %v2452_v44 = vsel %vm1468_vm5, %v5028_v23, 0  ;;  %v3235_v21 = vsel %vm1468_vm5, %v5055_v10, 0 }
 0x226   : > { %4558 = vmatprep.subr.bf16.mxu1 %v5025_v58 }
 0x229   : > { %4559 = vmatpush3.bf16.msra.mxu1 %v5025_v58  ;;  %v5057_v58 = vld [vmem:[%s6422_s3 + $0x80] ss:$0 sps:$4 sm:$0x33]  }
 0x22a   : > { %4560 = vmatprep.subr.bf16.mxu1 %v5026_v19 }
 0x22d   : > { %4561 = vmatpush3.bf16.msra.mxu1 %v5026_v19  ;;  %v3296_v19 = vsel %vm1468_vm5, %v5057_v58, 0 }
 0x22e   : > { %4562 = vmatprep.subr.bf16.mxu1 %v5027_v42 }
 0x231   : > { %4563 = vmatpush3.bf16.msra.mxu1 %v5027_v42  ;;  %v5058_v42 = vld [vmem:[%s6422_s3 + $0x84] sm:$0xff]  }
 0x232   : > { %4929 = vmatprep.subr.msk.bf16.mxu1 %vm1468_vm5, %v5028_v23 }
 0x235   : > { %4565 = vmatpush3.bf16.msra.mxu1 %v2452_v44  ;;  %v5059_v44 = vld [vmem:[%s6422_s3 + $0x8c] ss:$0 sps:$4 sm:$0x33]  }
 0x236   : > { %4574 = vmatprep.subr.bf16.mxu1 %v5029_v9 }
 0x238   : > { %4567 = vmatmul.mubr.msk.bf16.vlgmr.msra.gmra.mrb[8].mxu1 %vm1335_vm3, %v5853_v57  ;;  %v5033_v57 = vld [vmem:[%s6421_s2 + $0x1c0] sm:$0xff]  }
 0x239   : > { %4570 = vmatprep.mubr.msk.bf16.mxu1 %vm1335_vm3, %v5867_v28  ;;  %4575 = vmatpush3.bf16.msra.mxu1 %v5029_v9  ;;  %v5034_v28 = vld [vmem:[%s6421_s2 + $0x1c8] sm:$0xff]   ;;  %v3357_v9 = vsel %vm1468_vm5, %v5059_v44, 0 }
 0x23a   : > { %4576 = vmatprep.subr.bf16.mxu1 %v5030_v11 }
 0x23d   : > { %4577 = vmatpush3.bf16.msra.mxu1 %v5030_v11  ;;  %v5060_v11 = vld [vmem:[%s6422_s3 + $0x90] sm:$0xff]  }
 0x23e   : > { %4578 = vmatprep.subr.bf16.mxu1 %v5031_v12 }
 0x240   : > { %4571 = vmatmul.mubr.msk.bf16.gmra.mrb[12].mxu1 %vm1335_vm3, %v2385_v62  ;;  %v3418_v62 = vsel %vm1468_vm5, %v5061_v3, 0 }
 0x241   : > { %4579 = vmatpush3.bf16.msra.mxu1 %v5031_v12  ;;  %4588 = vmatprep.mubr.msk.bf16.mxu1 %vm1335_vm3, %v5947_v6  ;;  %v2597_v6 = vsel %vm1468_vm5, %v5035_v34, 0 }
 0x242   : > { %4580 = vmatprep.subr.bf16.mxu1 %v5032_v2 }
 0x245   : > { %4581 = vmatpush3.bf16.msra.mxu1 %v5032_v2  ;;  %v5062_v2 = vld [vmem:[%s6422_s3 + $0x9c] sm:$0xff]  }
 0x246   : > { %4582 = vmatprep.subr.bf16.mxu1 %v5033_v57 }
 0x249   : > { %4583 = vmatpush3.bf16.msra.mxu1 %v5033_v57 }
 0x24a   : > { %4584 = vmatprep.subr.bf16.mxu1 %v5034_v28 }
 0x24d   : > { %4585 = vmatpush3.bf16.msra.mxu1 %v5034_v28  ;;  %v5063_v28 = vld [vmem:[%s6422_s3 + $0xa4] ss:$0 sps:$4 sm:$0x33]  }
 0x24e   : > { %4930 = vmatprep.subr.msk.bf16.mxu1 %vm1468_vm5, %v5035_v34  ;;  %v3480_v34 = vsel %vm1468_vm5, %v5063_v28, 0 }
 0x251   : > { %4587 = vmatpush3.bf16.msra.mxu1 %v2597_v6  ;;  %v5064_v6 = vld [vmem:[%s6422_s3 + $0xa8] sm:$0xff]  }
 0x254   : > { %4589 = vmatmul.mubr.msk.bf16.vlgmr.msra.gmra.mrb[8].mxu1 %vm1335_vm3, %v5954_v47 }
 0x255   : > { %4592 = vmatprep.mubr.msk.bf16.mxu1 %vm1335_vm3, %v5967_v15  ;;  %v5039_v15 = vld [vmem:[%s6422_s3 + $0x14] ss:$0 sps:$4 sm:$0x33]  }
 0x256   : > { %v2745_v45 = vsel %vm1468_vm5, %v5039_v15, 0 }
 0x25c   : > { %4593 = vmatmul.mubr.msk.bf16.gmra.mrb[12].mxu1 %vm1335_vm3, %v2530_v49  ;;  %v5065_v49 = vld [vmem:[%s6422_s3 + $0xb0] ss:$0 sps:$4 sm:$0x33]  }
 0x327   : > { %v4590_v38 = vpop.f32.mrb[8].mxu1 }
 0x328   : > { %v2633_v25 = vpop.f32.mrb[9].mxu1  ;;  %v2910_v14 = vpack.c.bf16 %v4590_v38, %v4590_v38  ;;  %v3541_v38 = vsel %vm1468_vm5, %v5065_v49, 0 }
 0x329   : > { %v2665_v47 = vpack.c.bf16 %v2633_v25, %v2633_v25  ;;  %v4591_v59 = vpop.f32.mrb[10].mxu1  ;;  %v5066_v25 = vld [vmem:[%s6422_s3 + $0xb4] sm:$0xff]  }
 0x32a   : > { %v2636_v52 = vpop.f32.mrb[11].mxu1  ;;  %v2976_v8 = vrot.slane %v2910_v14, 1  ;;  %v3037_v37 = vrot.slane %v2910_v14, 2  ;;  %v3098_v48 = vrot.slane %v2910_v14, 3 }
 0x32b   : > { %4601 = vmatmul.mubr.msk.bf16.vlgmr.msra.gmra.mrb[8].mxu0 %vm2678_vm7, %v2665_v47  ;;  %v2731_v54 = vrot.slane %v2665_v47, 1  ;;  %v2792_v29 = vrot.slane %v2665_v47, 2  ;;  %v2853_v39 = vrot.slane %v2665_v47, 3  ;;  %v5067_v47 = vld [vmem:[%s6422_s3 + $0xbc] ss:$0 sps:$4 sm:$0x33]  }
 0x32c   : > { %4605 = vmatpush3.bf16.msra.mxu0 %v5038_v1  ;;  %4608 = vmatprep.mubr.msk.bf16.mxu0 %vm5133_vm6, %v5132_v26  ;;  %v3602_v59 = vsel %vm1468_vm5, %v5067_v47, 0  ;;  %v2664_v52 = vld [vmem:[%s6423_s4] sm:$0x1] }
 0x32d   : > { %4606 = vmatprep.subr.bf16.mxu0 %v5132_v26 }
 0x32f   : > { %v6192_v36 = vpop.f32.mrb[12].mxu1 }
 0x330   : > { %v6194_v40 = vpop.f32.mrb[13].mxu1  ;;  %4607 = vmatpush3.bf16.msra.mxu0 %v2745_v45  ;;  %v3400_v57 = vpack.c.bf16 %v6192_v36, %v6192_v36 }
 0x331   : > { %v4595_v18 = vpop.f32.mrb[14].mxu1  ;;  %4612 = vmatprep.subr.bf16.mxu0 %v5132_v26  ;;  %v3155_v35 = vpack.c.bf16 %v6194_v40, %v6194_v40 }
 0x332   : > { %v2650_v61 = vpop.f32.mrb[15].mxu1  ;;  %v3466_v63 = vrot.slane %v3400_v57, 1  ;;  %v3527_v1 = vrot.slane %v3400_v57, 2  ;;  %v3588_v15 = vrot.slane %v3400_v57, 3 }
 0x333   : > { %v3221_v60 = vrot.slane %v3155_v35, 1  ;;  %v3282_v23 = vrot.slane %v3155_v35, 2  ;;  %v3343_v12 = vrot.slane %v3155_v35, 3 }
 0x337   : > { %4609 = vmatmul.mubr.msk.bf16.vlgmr.msra.gmra.mrb[8].mxu0 %vm2678_vm7, %v2731_v54 }
 0x338   : > { %4613 = vmatpush3.bf16.msra.mxu0 %v5040_v22  ;;  %4616 = vmatprep.mubr.msk.bf16.mxu0 %vm5133_vm6, %v5132_v26 }
 0x339   : > { %4614 = vmatprep.subr.bf16.mxu0 %v5132_v26 }
 0x33c   : > { %4615 = vmatpush3.bf16.msra.mxu0 %v2806_v51 }
 0x33d   : > { %4620 = vmatprep.subr.bf16.mxu0 %v5132_v26 }
 0x343   : > { %4617 = vmatmul.mubr.msk.bf16.vlgmr.msra.gmra.mrb[8].mxu0 %vm2678_vm7, %v2792_v29 }
 0x344   : > { %4621 = vmatpush3.bf16.msra.mxu0 %v5042_v33  ;;  %4624 = vmatprep.mubr.msk.bf16.mxu0 %vm5133_vm6, %v5132_v26 }
 0x345   : > { %4622 = vmatprep.subr.bf16.mxu0 %v5132_v26 }
 0x348   : > { %4623 = vmatpush3.bf16.msra.mxu0 %v2867_v7 }
 0x349   : > { %4628 = vmatprep.subr.bf16.mxu0 %v5132_v26 }
 0x34f   : > { %4625 = vmatmul.mubr.msk.bf16.vlgmr.msra.gmra.mrb[8].mxu0 %vm2678_vm7, %v2853_v39 }
 0x350   : > { %4629 = vmatpush3.bf16.msra.mxu0 %v5044_v46  ;;  %4632 = vmatprep.mubr.msk.bf16.mxu0 %vm5133_vm6, %v5132_v26 }
 0x351   : > { %4630 = vmatprep.subr.bf16.mxu0 %v5132_v26 }
 0x354   : > { %4631 = vmatpush3.bf16.msra.mxu0 %v2928_v17 }
 0x355   : > { %4636 = vmatprep.subr.bf16.mxu0 %v5132_v26 }
 0x35b   : > { %4633 = vmatmul.mubr.msk.bf16.vlgmr.msra.gmra.mrb[8].mxu0 %vm2678_vm7, %v2910_v14 }
 0x35c   : > { %4637 = vmatpush3.bf16.msra.mxu0 %v5046_v16  ;;  %4640 = vmatprep.mubr.msk.bf16.mxu0 %vm5133_vm6, %v5132_v26 }
 0x35d   : > { %4638 = vmatprep.subr.bf16.mxu0 %v5132_v26 }
 0x360   : > { %4639 = vmatpush3.bf16.msra.mxu0 %v2990_v24 }
 0x361   : > { %4644 = vmatprep.subr.bf16.mxu0 %v5132_v26 }
 0x367   : > { %4641 = vmatmul.mubr.msk.bf16.vlgmr.msra.gmra.mrb[8].mxu0 %vm2678_vm7, %v2976_v8 }
 0x368   : > { %4645 = vmatpush3.bf16.msra.mxu0 %v5048_v32  ;;  %4648 = vmatprep.mubr.msk.bf16.mxu0 %vm5133_vm6, %v5132_v26 }
 0x369   : > { %4646 = vmatprep.subr.bf16.mxu0 %v5132_v26 }
 0x36c   : > { %4647 = vmatpush3.bf16.msra.mxu0 %v3051_v41 }
 0x36d   : > { %4652 = vmatprep.subr.bf16.mxu0 %v5132_v26 }
 0x373   : > { %4649 = vmatmul.mubr.msk.bf16.vlgmr.msra.gmra.mrb[8].mxu0 %vm2678_vm7, %v3037_v37 }
 0x374   : > { %4653 = vmatpush3.bf16.msra.mxu0 %v5050_v20  ;;  %4656 = vmatprep.mubr.msk.bf16.mxu0 %vm5133_vm6, %v5132_v26 }
 0x375   : > { %4654 = vmatprep.subr.bf16.mxu0 %v5132_v26 }
 0x378   : > { %4655 = vmatpush3.bf16.msra.mxu0 %v3112_v53 }
 0x379   : > { %4660 = vmatprep.subr.bf16.mxu0 %v5132_v26 }
 0x37f   : > { %4657 = vmatmul.mubr.msk.bf16.vlgmr.msra.gmra.mrb[8].mxu0 %vm2678_vm7, %v3098_v48 }
 0x380   : > { %4661 = vmatpush3.bf16.msra.mxu0 %v5052_v31  ;;  %4664 = vmatprep.mubr.msk.bf16.mxu0 %vm5133_vm6, %v5132_v26 }
 0x381   : > { %4662 = vmatprep.subr.bf16.mxu0 %v5132_v26 }
 0x384   : > { %4663 = vmatpush3.bf16.msra.mxu0 %v3173_v55 }
 0x385   : > { %4668 = vmatprep.subr.bf16.mxu0 %v5132_v26 }
 0x38b   : > { %4665 = vmatmul.mubr.msk.bf16.vlgmr.msra.gmra.mrb[8].mxu0 %vm2678_vm7, %v3155_v35 }
 0x38c   : > { %4669 = vmatpush3.bf16.msra.mxu0 %v5054_v56  ;;  %4672 = vmatprep.mubr.msk.bf16.mxu0 %vm5133_vm6, %v5132_v26 }
 0x38d   : > { %4670 = vmatprep.subr.bf16.mxu0 %v5132_v26 }
 0x390   : > { %4671 = vmatpush3.bf16.msra.mxu0 %v3235_v21 }
 0x391   : > { %4676 = vmatprep.subr.bf16.mxu0 %v5132_v26 }
 0x397   : > { %4673 = vmatmul.mubr.msk.bf16.vlgmr.msra.gmra.mrb[8].mxu0 %vm2678_vm7, %v3221_v60 }
 0x398   : > { %4677 = vmatpush3.bf16.msra.mxu0 %v5056_v27  ;;  %4680 = vmatprep.mubr.msk.bf16.mxu0 %vm5133_vm6, %v5132_v26 }
 0x399   : > { %4678 = vmatprep.subr.bf16.mxu0 %v5132_v26 }
 0x39c   : > { %4679 = vmatpush3.bf16.msra.mxu0 %v3296_v19 }
 0x39d   : > { %4684 = vmatprep.subr.bf16.mxu0 %v5132_v26 }
 0x3a3   : > { %4681 = vmatmul.mubr.msk.bf16.vlgmr.msra.gmra.mrb[8].mxu0 %vm2678_vm7, %v3282_v23 }
 0x3a4   : > { %4685 = vmatpush3.bf16.msra.mxu0 %v5058_v42  ;;  %4688 = vmatprep.mubr.msk.bf16.mxu0 %vm5133_vm6, %v5132_v26 }
 0x3a5   : > { %4686 = vmatprep.subr.bf16.mxu0 %v5132_v26 }
 0x3a8   : > { %4687 = vmatpush3.bf16.msra.mxu0 %v3357_v9 }
 0x3a9   : > { %4692 = vmatprep.subr.bf16.mxu0 %v5132_v26 }
 0x3af   : > { %4689 = vmatmul.mubr.msk.bf16.vlgmr.msra.gmra.mrb[8].mxu0 %vm2678_vm7, %v3343_v12 }
 0x3b0   : > { %4693 = vmatpush3.bf16.msra.mxu0 %v5060_v11  ;;  %4696 = vmatprep.mubr.msk.bf16.mxu0 %vm5133_vm6, %v5132_v26 }
 0x3b1   : > { %4694 = vmatprep.subr.bf16.mxu0 %v5132_v26 }
 0x3b4   : > { %4695 = vmatpush3.bf16.msra.mxu0 %v3418_v62 }
 0x3b5   : > { %4700 = vmatprep.subr.bf16.mxu0 %v5132_v26 }
 0x3bb   : > { %4697 = vmatmul.mubr.msk.bf16.vlgmr.msra.gmra.mrb[8].mxu0 %vm2678_vm7, %v3400_v57 }
 0x3bc   : > { %4701 = vmatpush3.bf16.msra.mxu0 %v5062_v2  ;;  %4704 = vmatprep.mubr.msk.bf16.mxu0 %vm5133_vm6, %v5132_v26 }
 0x3bd   : > { %4702 = vmatprep.subr.bf16.mxu0 %v5132_v26 }
 0x3c0   : > { %4703 = vmatpush3.bf16.msra.mxu0 %v3480_v34 }
 0x3c1   : > { %4708 = vmatprep.subr.bf16.mxu0 %v5132_v26 }
 0x3c7   : > { %4705 = vmatmul.mubr.msk.bf16.vlgmr.msra.gmra.mrb[8].mxu0 %vm2678_vm7, %v3466_v63 }
 0x3c8   : > { %4709 = vmatpush3.bf16.msra.mxu0 %v5064_v6  ;;  %4712 = vmatprep.mubr.msk.bf16.mxu0 %vm5133_vm6, %v5132_v26 }
 0x3c9   : > { %4710 = vmatprep.subr.bf16.mxu0 %v5132_v26 }
 0x3cc   : > { %4711 = vmatpush3.bf16.msra.mxu0 %v3541_v38 }
 0x3cd   : > { %4716 = vmatprep.subr.bf16.mxu0 %v5132_v26 }
 0x3d3   : > { %4713 = vmatmul.mubr.msk.bf16.vlgmr.msra.gmra.mrb[8].mxu0 %vm2678_vm7, %v3527_v1 }
 0x3d4   : > { %4717 = vmatpush3.bf16.msra.mxu0 %v5066_v25  ;;  %4720 = vmatprep.mubr.msk.bf16.mxu0 %vm5133_vm6, %v5132_v26 }
 0x3d5   : > { %4718 = vmatprep.subr.bf16.mxu0 %v5132_v26 }
 0x3d8   : > { %4719 = vmatpush3.bf16.msra.mxu0 %v3602_v59 }
 0x3df   : > { %4721 = vmatmul.mubr.msk.bf16.vlgmr.msra.gmra.mrb[8].mxu0 %vm2678_vm7, %v3588_v15 }
 0x4b2   : > { %v3638_v45 = vpop.f32.mrb[8].mxu0 }
 0x4b3   : > { %v4732_v36 = vadd.f32 %v3638_v45, %v2664_v52  ;;  %v4722_v40 = vpop.f32.mrb[9].mxu0 }
 0x4b4   : > { %v3641_v18 = vpop.f32.mrb[10].mxu0 }
 0x4b5   : > { %v3645_v26 = vmax.f32 %v4732_v36, 0.0  ;;  %v4723_v61 = vpop.f32.mrb[11].mxu0 }
 0x4b7   : > { %3646 = vst [vmem:[%s219_s14] sm:$0x1] %v3645_v26 }
 0x4b8   : > { %5081 = shalt.err (!%p5078_p3)
}
 0x4b9   : > { %s5082_s7 = scalar_lea.hbm %s6377_s23, 16  ;;  %s5086_s10 = scalar_lea.hbm %s6424_s5, 32 }
 0x4ba   : > { %p5083_p4 = scmp.ne.s32.totalorder %s6377_s23, %s5082_s7  ;;  %p5087_p9 = scmp.lt.u32.totalorder %s6377_s23, %s6424_s5 }
 0x4bb   : > { %p5088_p10 = scmp.lt.u32.totalorder %s5086_s10, %s5082_s7  ;;  %p5090_p12 = scmp.lt.u32.totalorder %s5082_s7, %s6377_s23 }
 0x4bc   : > { %p5084_p7 = pnand %p5083_p4, %p5203_p5 }
 0x4bd   : > { %p5089_p11 = por %p5088_p10, %p5087_p9 }
 0x4be   : > { %p5085_p8 = pneg %p5084_p7 }
 0x4bf   : > { %p5091_p13 = por %p5090_p12, %p5089_p11 }
 0x4c1   : > { %p5092_p0 = pnand %p5091_p13, %p5085_p8 }
 0x4c3   : > { %5095 = shalt.err (!%p5092_p0)
}
 0x4c4   : > { %4932 = dma.vmem_to_hbm [thread:$0]  (%p5203_p5), %s6379_s15, 16, %s6377_s23, %s3648_s25  }
 0x4c5 PF: > { %p4938_p1 = scmp.ge.s32.totalorder %s5130_s21, 2  ;;  %s3672_s13 = sand.u32 1, %s5118_s18  }
 0x4c6   : > { %s3673_s14 = scalar_lea.sflag [#allocation4], %s3672_s13 }
 0x4c7   : > { %p4935_p2 = pnand %p4938_p1, %p5207_p6 }
 0x4c9   : > { %5113 = dma.done.wait (!%p4935_p2), %s3673_s14, 16  }
 0x4ca   : > { %5115 = vsyncadd (!%p4935_p2), %s3673_s14, 4294967280  ;;  %p15_p3 = scmp.ge.s32.totalorder %s5190_s24, 4   ;;  %s6537_s18 = smov %s5122_s19 }
 0x4cb   : > { %s6538_s19 = smov %s5126_s20  ;;  %s6539_s20 = smov %s5201_s27 }
 0x4cc   : > { %s6540_s21 = smov %s5190_s24  ;;  %17 = sbr.rel (!%p15_p3) target bundleno = 3 (0x3), region = 111 }
 0x4d3   :  { %3677 = vsyncpa [#allocation4], 1 }
 0x4d4   :  { %3679 = vsyncpa [#allocation4 + $0x1], 1 }

</bundles_post_ra>
